<compile_context>
chip_gen: v7x
topology: tpu7x:2x2x1
jax: 0.10.0
libtpu: 0.0.40
codegen_flags: <defaults>
</compile_context>

<pallas_src>
import functools

import jax
import jax.numpy as jnp
from jax.experimental import pallas as pl
from jax.experimental.pallas import tpu as pltpu

HP = 128      # padded hidden width: exactly one 128x128 MXU tile; keep at 128
OUT_P = 128   # lane-dense padded output width (wrapper slices back to D_out)


def _mlp_kernel(x_ref, w1_ref, b1_ref, w2_ref, b2_ref,
                w3_ref, b3_ref, w4_ref, b4_ref, y_ref, *, act_dtype):
    """y = (sigmoid(sigmoid(sigmoid(x@W1+b1)@W2+b2)@W3+b3))@W4 + b4."""

    def _sigmoid(z):
        # 0.5*tanh(0.5*z)+0.5: single EUP push + cheap VPU mul/add,
        # numerically safe for any z (no exp overflow).
        return jnp.tanh(z * 0.5) * 0.5 + 0.5

    xb = x_ref[...].astype(jnp.bfloat16)

    # layer 1: (Bt, D_in) @ (D_in, HP) -> f32 acc, bias+sigmoid in act_dtype
    z1 = jnp.dot(xb, w1_ref[...], preferred_element_type=jnp.float32)
    z1 = z1.astype(act_dtype) + b1_ref[...].astype(act_dtype)
    h1 = _sigmoid(z1).astype(jnp.bfloat16)

    # layer 2: (Bt, HP) @ (HP, HP)
    z2 = jnp.dot(h1, w2_ref[...], preferred_element_type=jnp.float32)
    z2 = z2.astype(act_dtype) + b2_ref[...].astype(act_dtype)
    h2 = _sigmoid(z2).astype(jnp.bfloat16)

    # layer 3: (Bt, HP) @ (HP, HP)
    # NOTE: padded lanes compute sigmoid(0) = 0.5.  That is harmless ONLY
    # because prepare_params zero-pads the matching ROWS of the next weight
    # matrix (w3p / w4p), so those 0.5s hit zero columns.  Keep that invariant.
    z3 = jnp.dot(h2, w3_ref[...], preferred_element_type=jnp.float32)
    z3 = z3.astype(act_dtype) + b3_ref[...].astype(act_dtype)
    h3 = _sigmoid(z3).astype(jnp.bfloat16)

    # layer 4 (no activation): (Bt, HP) @ (HP, OUT_P) + (1, OUT_P)
    # Padded output columns are exactly zero (zero weight cols, zero bias).
    y = jnp.dot(h3, w4_ref[...], preferred_element_type=jnp.float32) + b4_ref[...]
    y_ref[...] = y.astype(y_ref.dtype)


def prepare_params(w1, b1, w2, b2, w3, b3, w4, b4, hp=HP, out_p=OUT_P):
    """One-time conversion from nn.Linear layout to kernel layout.

    - transpose weights to (in, out)
    - ZERO-pad hidden dims to `hp` lanes and the output dim to `out_p` lanes.
      Zero padding is load-bearing: padded sigmoid outputs (0.5) must hit zero
      rows of the next weight, and padded output columns must stay zero.
    - cast weights to bf16 (MXU inputs); biases stay f32 (cast in-kernel).
    Do this once at parameter-load time, NOT per forward call.
    """
    D_in = w1.shape[1]
    D_out = w4.shape[0]
    assert D_out <= out_p

    def pad2d(a, shape):
        out = jnp.zeros(shape, dtype=jnp.float32)
        return out.at[: a.shape[0], : a.shape[1]].set(a.astype(jnp.float32))

    def pad_bias(b, n):
        out = jnp.zeros((1, n), dtype=jnp.float32)
        return out.at[0, : b.shape[0]].set(b.astype(jnp.float32))

    w1p = pad2d(w1.T, (D_in, hp)).astype(jnp.bfloat16)
    w2p = pad2d(w2.T, (hp, hp)).astype(jnp.bfloat16)
    w3p = pad2d(w3.T, (hp, hp)).astype(jnp.bfloat16)
    w4p = pad2d(w4.T, (hp, out_p)).astype(jnp.bfloat16)
    b1p = pad_bias(b1, hp)
    b2p = pad_bias(b2, hp)
    b3p = pad_bias(b3, hp)
    b4p = pad_bias(b4, out_p)
    return (w1p, b1p, w2p, b2p, w3p, b3p, w4p, b4p)


def _default_tile_b(B, device_kind):
    """Grid sizing: one big step on single-TC chips at small B; on v7x keep
    nb a multiple of 2 (one shard per TensorCore), splitting further only for
    large batches so each core gets >= 2 steps to pipeline DMAs."""
    kind = (device_kind or "").lower()
    if "v7" in kind and B % 2 == 0:
        tile = B // 2
        while tile > 1024 and tile % 2 == 0:
            tile //= 2
        return max(tile, 8)
    tile = B
    while tile > 2048 and tile % 2 == 0:
        tile //= 2
    return tile


def dummy_network_forward(x, params, d_out, *, tile_b=None, act_dtype=None):
    """Forward pass of DummyNetwork on pre-prepared params. Returns (B, d_out)."""
    w1p, b1p, w2p, b2p, w3p, b3p, w4p, b4p = params
    B, D_in = x.shape
    hp = w1p.shape[1]
    out_p = w4p.shape[1]

    device_kind = jax.devices()[0].device_kind
    if tile_b is None:
        tile_b = _default_tile_b(B, device_kind)
    tile_b = min(tile_b, B)
    assert B % tile_b == 0, "pad the batch to a multiple of tile_b"
    nb = B // tile_b

    if act_dtype is None:
        # v5e has no bf16 VPU/EUP -> keep activations in f32 there.
        act_dtype = jnp.float32 if "v5" in device_kind.lower() else jnp.bfloat16

    # Advisory cost hint for XLA's scheduler around the custom call.
    flops = 2 * B * (D_in * hp + hp * hp + hp * hp + hp * out_p)
    bytes_accessed = int(
        x.size * x.dtype.itemsize
        + sum(int(a.size) * a.dtype.itemsize for a in params)
        + B * out_p * 4
    )
    cost = pl.CostEstimate(
        flops=flops,
        transcendentals=3 * B * hp,        # one tanh per hidden element
        bytes_accessed=bytes_accessed,
    )

    x_spec = pl.BlockSpec((tile_b, D_in), lambda i: (i, 0))
    y_spec = pl.BlockSpec((tile_b, out_p), lambda i: (i, 0))

    def resident(a):
        # full-array block, same index every grid step -> stays in VMEM
        return pl.BlockSpec(a.shape, lambda i: (0, 0))

    y_padded = pl.pallas_call(
        functools.partial(_mlp_kernel, act_dtype=act_dtype),
        out_shape=jax.ShapeDtypeStruct((B, out_p), jnp.float32),
        grid=(nb,),
        in_specs=[x_spec,
                  resident(w1p), resident(b1p),
                  resident(w2p), resident(b2p),
                  resident(w3p), resident(b3p),
                  resident(w4p), resident(b4p)],
        out_specs=y_spec,
        compiler_params=pltpu.CompilerParams(
            dimension_semantics=("parallel",)),
        cost_estimate=cost,
    )(x, *params)

    return y_padded[:, :d_out]


if __name__ == "__main__":
    # Module shapes: D_in -> H -> H -> H+1 -> D_out.
    D_in, H, D_out = 32, 16, 8
    B = 512

    key = jax.random.PRNGKey(0)
    keys = jax.random.split(key, 9)

    x = jax.random.normal(keys[0], (B, D_in), dtype=jnp.float32)

    # nn.Linear parameter layout: weight (out, in), bias (out,)
    w1 = jax.random.normal(keys[1], (H, D_in), dtype=jnp.float32) * 0.1
    b1 = jax.random.normal(keys[2], (H,), dtype=jnp.float32) * 0.1
    w2 = jax.random.normal(keys[3], (H, H), dtype=jnp.float32) * 0.1
    b2 = jax.random.normal(keys[4], (H,), dtype=jnp.float32) * 0.1
    w3 = jax.random.normal(keys[5], (H + 1, H), dtype=jnp.float32) * 0.1
    b3 = jax.random.normal(keys[6], (H + 1,), dtype=jnp.float32) * 0.1
    w4 = jax.random.normal(keys[7], (D_out, H + 1), dtype=jnp.float32) * 0.1
    b4 = jax.random.normal(keys[8], (D_out,), dtype=jnp.float32) * 0.1

    # One-time parameter prep (outside the per-call path).
    params = prepare_params(w1, b1, w2, b2, w3, b3, w4, b4)

    y = dummy_network_forward(x, params, D_out)
    y = jax.block_until_ready(y)

    # Pure-JAX f32 reference (the PyTorch module is f64; kernel uses bf16 MXU
    # inputs + bf16/f32 activations, so the 2e-2 tolerance is intentional).
    def ref(x):
        h1 = jax.nn.sigmoid(x @ w1.T + b1)
        h2 = jax.nn.sigmoid(h1 @ w2.T + b2)
        h3 = jax.nn.sigmoid(h2 @ w3.T + b3)
        return h3 @ w4.T + b4

    y_ref = ref(x)
    assert y.shape == (B, D_out)
    max_err = float(jnp.max(jnp.abs(y - y_ref)))
    assert max_err < 2e-2, f"mismatch vs reference: max abs err {max_err}"

    print("KERNEL_OK")
</pallas_src>

<mosaic_0001>
module attributes {stable_mosaic.version = 11 : i64} {
  func.func @_mlp_kernel(%arg0: i32, %arg1: memref<512x32xf32, #tpu.memory_space<vmem>>, %arg2: memref<32x128xbf16, #tpu.memory_space<vmem>>, %arg3: memref<1x128xf32, #tpu.memory_space<vmem>>, %arg4: memref<128x128xbf16, #tpu.memory_space<vmem>>, %arg5: memref<1x128xf32, #tpu.memory_space<vmem>>, %arg6: memref<128x128xbf16, #tpu.memory_space<vmem>>, %arg7: memref<1x128xf32, #tpu.memory_space<vmem>>, %arg8: memref<128x128xbf16, #tpu.memory_space<vmem>>, %arg9: memref<1x128xf32, #tpu.memory_space<vmem>>, %arg10: memref<512x128xf32, #tpu.memory_space<vmem>>) attributes {dimension_semantics = [#tpu.dimension_semantics<parallel>], iteration_bounds = array<i64: 1>, scalar_prefetch = 0 : i64, scratch_operands = 0 : i64, tpu.core_type = #tpu.core_type<tc>, window_params = [{transform_indices = @transform_0, window_bounds = array<i64: 512, 32>}, {pipeline_mode = #tpu.pipeline_mode<synchronous>, transform_indices = @transform_1, window_bounds = array<i64: 32, 128>}, {pipeline_mode = #tpu.pipeline_mode<synchronous>, transform_indices = @transform_2, window_bounds = array<i64: 1, 128>}, {pipeline_mode = #tpu.pipeline_mode<synchronous>, transform_indices = @transform_3, window_bounds = array<i64: 128, 128>}, {pipeline_mode = #tpu.pipeline_mode<synchronous>, transform_indices = @transform_4, window_bounds = array<i64: 1, 128>}, {pipeline_mode = #tpu.pipeline_mode<synchronous>, transform_indices = @transform_5, window_bounds = array<i64: 128, 128>}, {pipeline_mode = #tpu.pipeline_mode<synchronous>, transform_indices = @transform_6, window_bounds = array<i64: 1, 128>}, {pipeline_mode = #tpu.pipeline_mode<synchronous>, transform_indices = @transform_7, window_bounds = array<i64: 128, 128>}, {pipeline_mode = #tpu.pipeline_mode<synchronous>, transform_indices = @transform_8, window_bounds = array<i64: 1, 128>}, {transform_indices = @transform_9, window_bounds = array<i64: 512, 128>}]} {
    %c0 = arith.constant 0 : index
    %c0_0 = arith.constant 0 : index
    %0 = vector.load %arg1[%c0, %c0_0] : memref<512x32xf32, #tpu.memory_space<vmem>>, vector<512x32xf32>
    %1 = arith.truncf %0 : vector<512x32xf32> to vector<512x32xbf16>
    %c0_1 = arith.constant 0 : index
    %c0_2 = arith.constant 0 : index
    %2 = vector.load %arg2[%c0_1, %c0_2] : memref<32x128xbf16, #tpu.memory_space<vmem>>, vector<32x128xbf16>
    %cst = arith.constant dense<0.000000e+00> : vector<512x128xf32>
    %3 = tpu.matmul %1, %2, %cst {dimension_numbers = #tpu.dot_dimension_numbers<[1], [0], [0], [1], [0, 0, 1, 1], [], []>} : vector<512x32xbf16>, vector<32x128xbf16>, vector<512x128xf32> -> vector<512x128xf32>
    %4 = arith.truncf %3 : vector<512x128xf32> to vector<512x128xbf16>
    %c0_3 = arith.constant 0 : index
    %c0_4 = arith.constant 0 : index
    %5 = vector.load %arg3[%c0_3, %c0_4] : memref<1x128xf32, #tpu.memory_space<vmem>>, vector<1x128xf32>
    %6 = arith.truncf %5 : vector<1x128xf32> to vector<1x128xbf16>
    %7 = vector.broadcast %6 : vector<1x128xbf16> to vector<512x128xbf16>
    %8 = arith.addf %4, %7 : vector<512x128xbf16>
    %cst_5 = arith.constant 5.000000e-01 : bf16
    %9 = vector.broadcast %cst_5 : bf16 to vector<512x128xbf16>
    %10 = arith.mulf %8, %9 : vector<512x128xbf16>
    %11 = math.tanh %10 : vector<512x128xbf16>
    %cst_6 = arith.constant 5.000000e-01 : bf16
    %12 = vector.broadcast %cst_6 : bf16 to vector<512x128xbf16>
    %13 = arith.mulf %11, %12 : vector<512x128xbf16>
    %cst_7 = arith.constant 5.000000e-01 : bf16
    %14 = vector.broadcast %cst_7 : bf16 to vector<512x128xbf16>
    %15 = arith.addf %13, %14 : vector<512x128xbf16>
    %c0_8 = arith.constant 0 : index
    %c0_9 = arith.constant 0 : index
    %16 = vector.load %arg4[%c0_8, %c0_9] : memref<128x128xbf16, #tpu.memory_space<vmem>>, vector<128x128xbf16>
    %cst_10 = arith.constant dense<0.000000e+00> : vector<512x128xf32>
    %17 = tpu.matmul %15, %16, %cst_10 {dimension_numbers = #tpu.dot_dimension_numbers<[1], [0], [0], [1], [0, 0, 1, 1], [], []>} : vector<512x128xbf16>, vector<128x128xbf16>, vector<512x128xf32> -> vector<512x128xf32>
    %18 = arith.truncf %17 : vector<512x128xf32> to vector<512x128xbf16>
    %c0_11 = arith.constant 0 : index
    %c0_12 = arith.constant 0 : index
    %19 = vector.load %arg5[%c0_11, %c0_12] : memref<1x128xf32, #tpu.memory_space<vmem>>, vector<1x128xf32>
    %20 = arith.truncf %19 : vector<1x128xf32> to vector<1x128xbf16>
    %21 = vector.broadcast %20 : vector<1x128xbf16> to vector<512x128xbf16>
    %22 = arith.addf %18, %21 : vector<512x128xbf16>
    %cst_13 = arith.constant 5.000000e-01 : bf16
    %23 = vector.broadcast %cst_13 : bf16 to vector<512x128xbf16>
    %24 = arith.mulf %22, %23 : vector<512x128xbf16>
    %25 = math.tanh %24 : vector<512x128xbf16>
    %cst_14 = arith.constant 5.000000e-01 : bf16
    %26 = vector.broadcast %cst_14 : bf16 to vector<512x128xbf16>
    %27 = arith.mulf %25, %26 : vector<512x128xbf16>
    %cst_15 = arith.constant 5.000000e-01 : bf16
    %28 = vector.broadcast %cst_15 : bf16 to vector<512x128xbf16>
    %29 = arith.addf %27, %28 : vector<512x128xbf16>
    %c0_16 = arith.constant 0 : index
    %c0_17 = arith.constant 0 : index
    %30 = vector.load %arg6[%c0_16, %c0_17] : memref<128x128xbf16, #tpu.memory_space<vmem>>, vector<128x128xbf16>
    %cst_18 = arith.constant dense<0.000000e+00> : vector<512x128xf32>
    %31 = tpu.matmul %29, %30, %cst_18 {dimension_numbers = #tpu.dot_dimension_numbers<[1], [0], [0], [1], [0, 0, 1, 1], [], []>} : vector<512x128xbf16>, vector<128x128xbf16>, vector<512x128xf32> -> vector<512x128xf32>
    %32 = arith.truncf %31 : vector<512x128xf32> to vector<512x128xbf16>
    %c0_19 = arith.constant 0 : index
    %c0_20 = arith.constant 0 : index
    %33 = vector.load %arg7[%c0_19, %c0_20] : memref<1x128xf32, #tpu.memory_space<vmem>>, vector<1x128xf32>
    %34 = arith.truncf %33 : vector<1x128xf32> to vector<1x128xbf16>
    %35 = vector.broadcast %34 : vector<1x128xbf16> to vector<512x128xbf16>
    %36 = arith.addf %32, %35 : vector<512x128xbf16>
    %cst_21 = arith.constant 5.000000e-01 : bf16
    %37 = vector.broadcast %cst_21 : bf16 to vector<512x128xbf16>
    %38 = arith.mulf %36, %37 : vector<512x128xbf16>
    %39 = math.tanh %38 : vector<512x128xbf16>
    %cst_22 = arith.constant 5.000000e-01 : bf16
    %40 = vector.broadcast %cst_22 : bf16 to vector<512x128xbf16>
    %41 = arith.mulf %39, %40 : vector<512x128xbf16>
    %cst_23 = arith.constant 5.000000e-01 : bf16
    %42 = vector.broadcast %cst_23 : bf16 to vector<512x128xbf16>
    %43 = arith.addf %41, %42 : vector<512x128xbf16>
    %c0_24 = arith.constant 0 : index
    %c0_25 = arith.constant 0 : index
    %44 = vector.load %arg8[%c0_24, %c0_25] : memref<128x128xbf16, #tpu.memory_space<vmem>>, vector<128x128xbf16>
    %cst_26 = arith.constant dense<0.000000e+00> : vector<512x128xf32>
    %45 = tpu.matmul %43, %44, %cst_26 {dimension_numbers = #tpu.dot_dimension_numbers<[1], [0], [0], [1], [0, 0, 1, 1], [], []>} : vector<512x128xbf16>, vector<128x128xbf16>, vector<512x128xf32> -> vector<512x128xf32>
    %c0_27 = arith.constant 0 : index
    %c0_28 = arith.constant 0 : index
    %46 = vector.load %arg9[%c0_27, %c0_28] : memref<1x128xf32, #tpu.memory_space<vmem>>, vector<1x128xf32>
    %47 = vector.broadcast %46 : vector<1x128xf32> to vector<512x128xf32>
    %48 = arith.addf %45, %47 : vector<512x128xf32>
    %c0_29 = arith.constant 0 : index
    %c0_30 = arith.constant 0 : index
    %49 = vector.load %arg10[%c0_29, %c0_30] : memref<512x128xf32, #tpu.memory_space<vmem>>, vector<512x128xf32>
    tpu.vector_store %arg10[%c0_29, %c0_30], %48 {strides = array<i32>} : memref<512x128xf32, #tpu.memory_space<vmem>>, vector<512x128xf32>,
    return
  }
  func.func @transform_0(%arg0: i32) -> (i32, i32) {
    %c0_i32 = arith.constant 0 : i32
    %c0_i32_0 = arith.constant 0 : i32
    return %arg0, %c0_i32 : i32, i32
  }
  func.func @transform_1(%arg0: i32) -> (i32, i32) {
    %c0_i32 = arith.constant 0 : i32
    %c0_i32_0 = arith.constant 0 : i32
    %c0_i32_1 = arith.constant 0 : i32
    return %c0_i32, %c0_i32_0 : i32, i32
  }
  func.func @transform_2(%arg0: i32) -> (i32, i32) {
    %c0_i32 = arith.constant 0 : i32
    %c0_i32_0 = arith.constant 0 : i32
    %c0_i32_1 = arith.constant 0 : i32
    return %c0_i32, %c0_i32_0 : i32, i32
  }
  func.func @transform_3(%arg0: i32) -> (i32, i32) {
    %c0_i32 = arith.constant 0 : i32
    %c0_i32_0 = arith.constant 0 : i32
    %c0_i32_1 = arith.constant 0 : i32
    return %c0_i32, %c0_i32_0 : i32, i32
  }
  func.func @transform_4(%arg0: i32) -> (i32, i32) {
    %c0_i32 = arith.constant 0 : i32
    %c0_i32_0 = arith.constant 0 : i32
    %c0_i32_1 = arith.constant 0 : i32
    return %c0_i32, %c0_i32_0 : i32, i32
  }
  func.func @transform_5(%arg0: i32) -> (i32, i32) {
    %c0_i32 = arith.constant 0 : i32
    %c0_i32_0 = arith.constant 0 : i32
    %c0_i32_1 = arith.constant 0 : i32
    return %c0_i32, %c0_i32_0 : i32, i32
  }
  func.func @transform_6(%arg0: i32) -> (i32, i32) {
    %c0_i32 = arith.constant 0 : i32
    %c0_i32_0 = arith.constant 0 : i32
    %c0_i32_1 = arith.constant 0 : i32
    return %c0_i32, %c0_i32_0 : i32, i32
  }
  func.func @transform_7(%arg0: i32) -> (i32, i32) {
    %c0_i32 = arith.constant 0 : i32
    %c0_i32_0 = arith.constant 0 : i32
    %c0_i32_1 = arith.constant 0 : i32
    return %c0_i32, %c0_i32_0 : i32, i32
  }
  func.func @transform_8(%arg0: i32) -> (i32, i32) {
    %c0_i32 = arith.constant 0 : i32
    %c0_i32_0 = arith.constant 0 : i32
    %c0_i32_1 = arith.constant 0 : i32
    return %c0_i32, %c0_i32_0 : i32, i32
  }
  func.func @transform_9(%arg0: i32) -> (i32, i32) {
    %c0_i32 = arith.constant 0 : i32
    %c0_i32_0 = arith.constant 0 : i32
    return %arg0, %c0_i32 : i32, i32
  }
}

</mosaic_0001>

<bundles_post_ra>
// kernel: tpu_custom_call.1
= control target key start
LH: loop header
LB: loop body
LE: loop exit
PB: predicated region body
PF: predicated region fallthrough
CT: control target
= control target key end

     0   :  { %vm147_vm0 = vcmask 261120   ;;  %s3616_s0 = inlined_call_operand.vmem [shape: f32[512,32], index: 0, kind: input, shape index: {}]   ;;  %s3617_s1 = inlined_call_operand.vmem [shape: bf16[32,128], index: 1, kind: input, shape index: {}]   ;;  %s3618_s2 = inlined_call_operand.vmem [shape: f32[1,128], index: 2, kind: input, shape index: {}]   ;;  %s3619_s3 = inlined_call_operand.vmem [shape: bf16[128,128], index: 3, kind: input, shape index: {}]   ;;  %s3620_s4 = inlined_call_operand.vmem [shape: f32[1,128], index: 4, kind: input, shape index: {}]   ;;  %s3621_s5 = inlined_call_operand.vmem [shape: bf16[128,128], index: 5, kind: input, shape index: {}]   ;;  %s3622_s6 = inlined_call_operand.vmem [shape: f32[1,128], index: 6, kind: input, shape index: {}]   ;;  %s3623_s7 = inlined_call_operand.vmem [shape: bf16[128,128], index: 7, kind: input, shape index: {}]   ;;  %s3624_s8 = inlined_call_operand.vmem [shape: f32[1,128], index: 8, kind: input, shape index: {}]   ;;  %s3625_s9 = inlined_call_operand.hbm [shape: f32[512,128], index: 9, kind: output, shape index: {}]  }
   0x1   :  { %v2822_v0 = vld [vmem:[%s3617_s1] sm:$0xff]   ;;  %v2823_v1 = vld [vmem:[%s3617_s1 + $0x8] sm:$0xff]   ;;  %v37_v5 = vld [vmem:[%s3616_s0 + $0x10] sm:$0xff] }
   0x2   :  { %2495 = vmatprep.subr.bf16.mxu0 %v2822_v0  ;;  %v35_v2 = vld [vmem:[%s3616_s0] sm:$0xff]  ;;  %v36_v3 = vld [vmem:[%s3616_s0 + $0x8] sm:$0xff]  ;;  %v38_v6 = vld [vmem:[%s3616_s0 + $0x18] sm:$0xff] }
   0x3   :  { %2496 = vmatpush3.bf16.msra.mxu0 %v2822_v0  ;;  %v99_v4 = vpack.c.bf16 %v36_v3, %v35_v2  ;;  %v39_v7 = vld [vmem:[%s3616_s0 + $0x20] sm:$0xff]  ;;  %v40_v8 = vld [vmem:[%s3616_s0 + $0x28] sm:$0xff]  ;;  %v100_v9 = vpack.c.bf16 %v38_v6, %v37_v5  ;;  %v41_v11 = vld [vmem:[%s3616_s0 + $0x30] sm:$0xff] }
   0x4   :  { %2497 = vmatprep.subr.bf16.mxu0 %v2823_v1  ;;  %v101_v10 = vpack.c.bf16 %v40_v8, %v39_v7  ;;  %v42_v12 = vld [vmem:[%s3616_s0 + $0x38] sm:$0xff]  ;;  %v43_v13 = vld [vmem:[%s3616_s0 + $0x40] sm:$0xff]  ;;  %v44_v14 = vld [vmem:[%s3616_s0 + $0x48] sm:$0xff] }
   0x5   :  { %2499 = vmatprep.mubr.msk.bf16.mxu0 %vm147_vm0, %v99_v4  ;;  %v102_v15 = vpack.c.bf16 %v42_v12, %v41_v11  ;;  %v103_v16 = vpack.c.bf16 %v44_v14, %v43_v13  ;;  %v45_v17 = vld [vmem:[%s3616_s0 + $0x50] sm:$0xff]  ;;  %v46_v18 = vld [vmem:[%s3616_s0 + $0x58] sm:$0xff]  ;;  %v47_v19 = vld [vmem:[%s3616_s0 + $0x60] sm:$0xff] }
   0x6   :  { %v48_v20 = vld [vmem:[%s3616_s0 + $0x68] sm:$0xff]  ;;  %v104_v21 = vpack.c.bf16 %v46_v18, %v45_v17  ;;  %v2824_v23 = vld [vmem:[%s3619_s3] sm:$0xff]   ;;  %v49_v24 = vld [vmem:[%s3616_s0 + $0x70] sm:$0xff] }
   0x7   :  { %2498 = vmatpush3.bf16.msra.mxu0 %v2823_v1  ;;  %v105_v22 = vpack.c.bf16 %v48_v20, %v47_v19  ;;  %v50_v25 = vld [vmem:[%s3616_s0 + $0x78] sm:$0xff]  ;;  %v2825_v26 = vld [vmem:[%s3619_s3 + $0x8] sm:$0xff]   ;;  %v51_v27 = vld [vmem:[%s3616_s0 + $0x80] sm:$0xff]  ;;  %2563 = vmatprep.subr.bf16.mxu1 %v2824_v23 }
   0x8   :  { %v52_v28 = vld [vmem:[%s3616_s0 + $0x88] sm:$0xff]  ;;  %2564 = vmatpush3.bf16.msra.mxu1 %v2824_v23  ;;  %v106_v29 = vpack.c.bf16 %v50_v25, %v49_v24  ;;  %v53_v31 = vld [vmem:[%s3616_s0 + $0x90] sm:$0xff]  ;;  %v54_v32 = vld [vmem:[%s3616_s0 + $0x98] sm:$0xff] }
   0x9   :  { %2565 = vmatprep.subr.bf16.mxu1 %v2825_v26  ;;  %v107_v30 = vpack.c.bf16 %v52_v28, %v51_v27  ;;  %v55_v33 = vld [vmem:[%s3616_s0 + $0xa0] sm:$0xff]  ;;  %v56_v34 = vld [vmem:[%s3616_s0 + $0xa8] sm:$0xff]  ;;  %v108_v35 = vpack.c.bf16 %v54_v32, %v53_v31 }
   0xa   :  { %2500 = vmatmul.mubr.msk.bf16.vlgmr.msra.gmra.mrb[0].mxu0 %vm147_vm0, %v100_v9  ;;  %v109_v36 = vpack.c.bf16 %v56_v34, %v55_v33 }
   0xb   :  { %2503 = vmatprep.mubr.msk.bf16.mxu0 %vm147_vm0, %v101_v10 }
   0xc   :  { %2566 = vmatpush3.bf16.msra.mxu1 %v2825_v26 }
  0x12   :  { %2504 = vmatmul.mubr.msk.bf16.gmra.mrb[4].mxu0 %vm147_vm0, %v102_v15 }
  0x13   :  { %2507 = vmatprep.mubr.msk.bf16.mxu0 %vm147_vm0, %v103_v16 }
  0x1a   :  { %2508 = vmatmul.mubr.msk.bf16.gmra.mrb[8].mxu0 %vm147_vm0, %v104_v21 }
  0x1b   :  { %2511 = vmatprep.mubr.msk.bf16.mxu0 %vm147_vm0, %v105_v22 }
  0x22   :  { %2512 = vmatmul.mubr.msk.bf16.gmra.mrb[12].mxu0 %vm147_vm0, %v106_v29 }
  0x23   :  { %2515 = vmatprep.mubr.msk.bf16.mxu0 %vm147_vm0, %v107_v30 }
  0x24   :  { %14 = vsyncpa [#allocation3], 0  ;;  %v57_v37 = vld [vmem:[%s3616_s0 + $0xb0] sm:$0xff]  ;;  %v58_v38 = vld [vmem:[%s3616_s0 + $0xb8] sm:$0xff] }
  0x25   :  { %v59_v39 = vld [vmem:[%s3616_s0 + $0xc0] sm:$0xff]  ;;  %v60_v40 = vld [vmem:[%s3616_s0 + $0xc8] sm:$0xff]  ;;  %v110_v41 = vpack.c.bf16 %v58_v38, %v57_v37  ;;  %v61_v43 = vld [vmem:[%s3616_s0 + $0xd0] sm:$0xff] }
  0x26   :  { %v111_v42 = vpack.c.bf16 %v60_v40, %v59_v39  ;;  %v62_v44 = vld [vmem:[%s3616_s0 + $0xd8] sm:$0xff]  ;;  %v63_v45 = vld [vmem:[%s3616_s0 + $0xe0] sm:$0xff]  ;;  %v64_v46 = vld [vmem:[%s3616_s0 + $0xe8] sm:$0xff] }
  0x27   :  { %v112_v47 = vpack.c.bf16 %v62_v44, %v61_v43  ;;  %v113_v48 = vpack.c.bf16 %v64_v46, %v63_v45  ;;  %v65_v49 = vld [vmem:[%s3616_s0 + $0xf0] sm:$0xff]  ;;  %v66_v50 = vld [vmem:[%s3616_s0 + $0xf8] sm:$0xff]  ;;  %v67_v51 = vld [vmem:[%s3616_s0 + $0x100] sm:$0xff] }
  0x28   :  { %v68_v52 = vld [vmem:[%s3616_s0 + $0x108] sm:$0xff]  ;;  %v114_v53 = vpack.c.bf16 %v66_v50, %v65_v49  ;;  %v69_v55 = vld [vmem:[%s3616_s0 + $0x110] sm:$0xff]  ;;  %v70_v56 = vld [vmem:[%s3616_s0 + $0x118] sm:$0xff] }
  0x29   :  { %v115_v54 = vpack.c.bf16 %v68_v52, %v67_v51  ;;  %v71_v57 = vld [vmem:[%s3616_s0 + $0x120] sm:$0xff]  ;;  %v72_v58 = vld [vmem:[%s3616_s0 + $0x128] sm:$0xff]  ;;  %v116_v59 = vpack.c.bf16 %v70_v56, %v69_v55  ;;  %v73_v61 = vld [vmem:[%s3616_s0 + $0x130] sm:$0xff] }
  0x2a   :  { %2516 = vmatmul.mubr.msk.bf16.gmra.mrb[16].mxu0 %vm147_vm0, %v108_v35  ;;  %v117_v60 = vpack.c.bf16 %v72_v58, %v71_v57  ;;  %v74_v62 = vld [vmem:[%s3616_s0 + $0x138] sm:$0xff]  ;;  %v75_v63 = vld [vmem:[%s3616_s0 + $0x140] sm:$0xff]  ;;  %v76_v0 = vld [vmem:[%s3616_s0 + $0x148] sm:$0xff] }
  0x2b   :  { %2519 = vmatprep.mubr.msk.bf16.mxu0 %vm147_vm0, %v109_v36  ;;  %v118_v1 = vpack.c.bf16 %v74_v62, %v73_v61  ;;  %v119_v2 = vpack.c.bf16 %v76_v0, %v75_v63  ;;  %v77_v3 = vld [vmem:[%s3616_s0 + $0x150] sm:$0xff]  ;;  %v78_v4 = vld [vmem:[%s3616_s0 + $0x158] sm:$0xff]  ;;  %v79_v5 = vld [vmem:[%s3616_s0 + $0x160] sm:$0xff] }
  0x2c   :  { %v80_v6 = vld [vmem:[%s3616_s0 + $0x168] sm:$0xff]  ;;  %v120_v7 = vpack.c.bf16 %v78_v4, %v77_v3  ;;  %v81_v9 = vld [vmem:[%s3616_s0 + $0x170] sm:$0xff]  ;;  %v82_v10 = vld [vmem:[%s3616_s0 + $0x178] sm:$0xff] }
  0x2d   :  { %v121_v8 = vpack.c.bf16 %v80_v6, %v79_v5  ;;  %v83_v11 = vld [vmem:[%s3616_s0 + $0x180] sm:$0xff]  ;;  %v84_v12 = vld [vmem:[%s3616_s0 + $0x188] sm:$0xff]  ;;  %v122_v13 = vpack.c.bf16 %v82_v10, %v81_v9  ;;  %v2826_v14 = vld [vmem:[%s3619_s3 + $0x10] sm:$0xff]  }
  0x2e   :  { %v123_v15 = vpack.c.bf16 %v84_v12, %v83_v11  ;;  %2567 = vmatprep.subr.bf16.mxu1 %v2826_v14  ;;  %v2827_v16 = vld [vmem:[%s3619_s3 + $0x18] sm:$0xff]   ;;  %v85_v17 = vld [vmem:[%s3616_s0 + $0x190] sm:$0xff]  ;;  %v87_v19 = vld [vmem:[%s3616_s0 + $0x1a0] sm:$0xff] }
  0x2f   :  { %2568 = vmatpush3.bf16.msra.mxu1 %v2826_v14  ;;  %v86_v18 = vld [vmem:[%s3616_s0 + $0x198] sm:$0xff]  ;;  %v88_v20 = vld [vmem:[%s3616_s0 + $0x1a8] sm:$0xff]  ;;  %v2828_v22 = vld [vmem:[%s3619_s3 + $0x20] sm:$0xff]  }
  0x30   :  { %2569 = vmatprep.subr.bf16.mxu1 %v2827_v16  ;;  %v124_v21 = vpack.c.bf16 %v86_v18, %v85_v17  ;;  %v125_v23 = vpack.c.bf16 %v88_v20, %v87_v19  ;;  %v2829_v24 = vld [vmem:[%s3619_s3 + $0x28] sm:$0xff]   ;;  %v89_v25 = vld [vmem:[%s3616_s0 + $0x1b0] sm:$0xff]  ;;  %v90_v26 = vld [vmem:[%s3616_s0 + $0x1b8] sm:$0xff] }
  0x31   :  { %v91_v27 = vld [vmem:[%s3616_s0 + $0x1c0] sm:$0xff]  ;;  %v92_v28 = vld [vmem:[%s3616_s0 + $0x1c8] sm:$0xff]  ;;  %v126_v29 = vpack.c.bf16 %v90_v26, %v89_v25  ;;  %v2830_v30 = vld [vmem:[%s3619_s3 + $0x30] sm:$0xff]  }
  0x32   :  { %2520 = vmatmul.mubr.msk.bf16.gmra.mrb[20].mxu0 %vm147_vm0, %v110_v41  ;;  %v127_v31 = vpack.c.bf16 %v92_v28, %v91_v27  ;;  %v2831_v32 = vld [vmem:[%s3619_s3 + $0x38] sm:$0xff]   ;;  %v93_v33 = vld [vmem:[%s3616_s0 + $0x1d0] sm:$0xff]  ;;  %v95_v35 = vld [vmem:[%s3616_s0 + $0x1e0] sm:$0xff] }
  0x33   :  { %2523 = vmatprep.mubr.msk.bf16.mxu0 %vm147_vm0, %v111_v42  ;;  %2570 = vmatpush3.bf16.msra.mxu1 %v2827_v16  ;;  %v94_v34 = vld [vmem:[%s3616_s0 + $0x1d8] sm:$0xff]  ;;  %v96_v36 = vld [vmem:[%s3616_s0 + $0x1e8] sm:$0xff]  ;;  %v97_v39 = vld [vmem:[%s3616_s0 + $0x1f0] sm:$0xff]  ;;  %v570_v42 = vlaneseq }
  0x34   :  { %2571 = vmatprep.subr.bf16.mxu1 %v2828_v22  ;;  %v128_v37 = vpack.c.bf16 %v94_v34, %v93_v33  ;;  %v129_v38 = vpack.c.bf16 %v96_v36, %v95_v35  ;;  %v98_v40 = vld [vmem:[%s3616_s0 + $0x1f8] sm:$0xff]  ;;  %v565_v43 = vld [vmem:[%s3618_s2] sm:$0x1]  ;;  %v2833_v11 = vld [vmem:[%s3621_s5 + $0x8] sm:$0xff]  }
  0x35   :  { %v130_v41 = vpack.c.bf16 %v98_v40, %v97_v39  ;;  %v566_v44 = vpack.c.bf16 %v565_v43, %v565_v43  ;;  %v571_v45 = vshrl.u32 %v570_v42, 7  ;;  %v2834_v12 = vld [vmem:[%s3621_s5 + $0x10] sm:$0xff]   ;;  %v2837_v39 = vld [vmem:[%s3621_s5 + $0x28] sm:$0xff]  }
  0x37   :  { %2572 = vmatpush3.bf16.msra.mxu1 %v2828_v22  ;;  %v568_v46 = vpack.i.b16 %v566_v44, %v566_v44 }
  0x38   :  { %2573 = vmatprep.subr.bf16.mxu1 %v2829_v24 }
  0x3a   :  { %2524 = vmatmul.mubr.msk.bf16.gmra.mrb[24].mxu0 %vm147_vm0, %v112_v47  ;;  %v3374_v47 = vsub.s32 0, %v571_v45 }
  0x3b   :  { %2527 = vmatprep.mubr.msk.bf16.mxu0 %vm147_vm0, %v113_v48  ;;  %2574 = vmatpush3.bf16.msra.mxu1 %v2829_v24 }
  0x3c   :  { %2575 = vmatprep.subr.bf16.mxu1 %v2830_v30  ;;  %v3377_v50 = vrot.slane %v568_v46, %v3374_v47 }
  0x3f   :  { %2576 = vmatpush3.bf16.msra.mxu1 %v2830_v30  ;;  %v2836_v30 = vld [vmem:[%s3621_s5 + $0x20] sm:$0xff]  }
  0x40   :  { %2577 = vmatprep.subr.bf16.mxu1 %v2831_v32 }
  0x42   :  { %2528 = vmatmul.mubr.msk.bf16.gmra.mrb[28].mxu0 %vm147_vm0, %v114_v53 }
  0x43   :  { %2531 = vmatprep.mubr.msk.bf16.mxu0 %vm147_vm0, %v115_v54  ;;  %2578 = vmatpush3.bf16.msra.mxu1 %v2831_v32  ;;  %v2832_v54 = vld [vmem:[%s3621_s5] sm:$0xff]  }
  0x44   :  { %2643 = vmatprep.subr.bf16.mxu0 %v2832_v54 }
  0x45   :  { %2644 = vmatpush3.bf16.msra.mxu0 %v2832_v54 }
  0x46   :  { %2645 = vmatprep.subr.bf16.mxu0 %v2833_v11 }
  0x49   :  { %2646 = vmatpush3.bf16.msra.mxu0 %v2833_v11 }
  0x4a   :  { %2532 = vmatmul.mubr.msk.bf16.gmra.mrb[32].mxu0 %vm147_vm0, %v116_v59  ;;  %2647 = vmatprep.subr.bf16.mxu0 %v2834_v12 }
  0x4b   :  { %2535 = vmatprep.mubr.msk.bf16.mxu0 %vm147_vm0, %v117_v60 }
  0x4d   :  { %2648 = vmatpush3.bf16.msra.mxu0 %v2834_v12 }
  0x52   :  { %2536 = vmatmul.mubr.msk.bf16.gmra.mrb[36].mxu0 %vm147_vm0, %v118_v1 }
  0x53   :  { %2539 = vmatprep.mubr.msk.bf16.mxu0 %vm147_vm0, %v119_v2 }
  0x5a   :  { %2540 = vmatmul.mubr.msk.bf16.gmra.mrb[40].mxu0 %vm147_vm0, %v120_v7 }
  0x5b   :  { %2543 = vmatprep.mubr.msk.bf16.mxu0 %vm147_vm0, %v121_v8 }
  0x62   :  { %2544 = vmatmul.mubr.msk.bf16.gmra.mrb[44].mxu0 %vm147_vm0, %v122_v13 }
  0x63   :  { %2547 = vmatprep.mubr.msk.bf16.mxu0 %vm147_vm0, %v123_v15 }
  0x6a   :  { %2548 = vmatmul.mubr.msk.bf16.gmra.mrb[48].mxu0 %vm147_vm0, %v124_v21  ;;  %v2835_v21 = vld [vmem:[%s3621_s5 + $0x18] sm:$0xff]  }
  0x6b   :  { %2551 = vmatprep.mubr.msk.bf16.mxu0 %vm147_vm0, %v125_v23  ;;  %2649 = vmatprep.subr.bf16.mxu0 %v2835_v21 }
  0x6c   :  { %2650 = vmatpush3.bf16.msra.mxu0 %v2835_v21 }
  0x6d   :  { %2651 = vmatprep.subr.bf16.mxu0 %v2836_v30 }
  0x70   :  { %2652 = vmatpush3.bf16.msra.mxu0 %v2836_v30 }
  0x71   :  { %2653 = vmatprep.subr.bf16.mxu0 %v2837_v39 }
  0x72   :  { %2552 = vmatmul.mubr.msk.bf16.gmra.mrb[52].mxu0 %vm147_vm0, %v126_v29 }
  0x73   :  { %2555 = vmatprep.mubr.msk.bf16.mxu0 %vm147_vm0, %v127_v31 }
  0x74   :  { %2654 = vmatpush3.bf16.msra.mxu0 %v2837_v39 }
  0x7a   :  { %2556 = vmatmul.mubr.msk.bf16.gmra.mrb[56].mxu0 %vm147_vm0, %v128_v37 }
  0x7b   :  { %2559 = vmatprep.mubr.msk.bf16.mxu0 %vm147_vm0, %v129_v38 }
  0x82   :  { %2560 = vmatmul.mubr.msk.bf16.gmra.mrb[60].mxu0 %vm147_vm0, %v130_v41 }
  0xdd   :  { %v2501_v48 = vpop.f32.mrb[0].mxu0 }
  0xde   :  { %v278_v49 = vpop.f32.mrb[1].mxu0 }
  0xdf   :  { %v2502_v51 = vpop.f32.mrb[2].mxu0 }
  0xe0   :  { %v534_v52 = vpack.c.bf16 %v2502_v51, %v2501_v48  ;;  %v281_v53 = vpop.f32.mrb[3].mxu0 }
  0xe1   :  { %v533_v55 = vpack.c.bf16 %v281_v53, %v278_v49  ;;  %v2838_v49 = vld [vmem:[%s3621_s5 + $0x30] sm:$0xff]  }
  0xe2   :  { %v575_v56 = vadd.bf16 %v3377_v50, %v534_v52  ;;  %2655 = vmatprep.subr.bf16.mxu0 %v2838_v49 }
  0xe3   :  { %v574_v57 = vadd.bf16 %v3377_v50, %v533_v55  ;;  %2656 = vmatpush3.bf16.msra.mxu0 %v2838_v49 }
  0xe4   :  { %v607_v58 = vmul.bf16 1056980736, %v575_v56 }
  0xe5   :  { %v606_v59 = vmul.bf16 1056980736, %v574_v57  ;;  %v2505_v60 = vpop.f32.mrb[4].mxu0 }
  0xe6   :  { %2848 = vtanh.bf16 %v607_v58  ;;  %v294_v61 = vpop.f32.mrb[5].mxu0 }
  0xe7   :  { %v2506_v62 = vpop.f32.mrb[6].mxu0  ;;  %2850 = vtanh.bf16 %v606_v59 }
  0xe8   :  { %v536_v63 = vpack.c.bf16 %v2506_v62, %v2505_v60  ;;  %v297_v0 = vpop.f32.mrb[7].mxu0 }
  0xe9   :  { %v535_v1 = vpack.c.bf16 %v297_v0, %v294_v61 }
  0xea   :  { %v577_v2 = vadd.bf16 %v3377_v50, %v536_v63 }
  0xeb   :  { %v576_v3 = vadd.bf16 %v3377_v50, %v535_v1 }
  0xec   :  { %v609_v4 = vmul.bf16 1056980736, %v577_v2 }
  0xed   :  { %v608_v5 = vmul.bf16 1056980736, %v576_v3  ;;  %v2509_v6 = vpop.f32.mrb[8].mxu0 }
  0xee   :  { %2852 = vtanh.bf16 %v609_v4  ;;  %v310_v7 = vpop.f32.mrb[9].mxu0 }
  0xef   :  { %2854 = vtanh.bf16 %v608_v5  ;;  %v2510_v8 = vpop.f32.mrb[10].mxu0 }
  0xf0   :  { %v538_v9 = vpack.c.bf16 %v2510_v8, %v2509_v6  ;;  %v313_v10 = vpop.f32.mrb[11].mxu0 }
  0xf1   :  { %v2849_v13 = vpop.eup %2848  ;;  %v537_v14 = vpack.c.bf16 %v313_v10, %v310_v7 }
  0xf2   :  { %v2851_v15 = vpop.eup %2850  ;;  %v579_v16 = vadd.bf16 %v3377_v50, %v538_v9  ;;  %v671_v17 = vmul.bf16 1056980736, %v2849_v13 }
  0xf3   :  { %v578_v18 = vadd.bf16 %v3377_v50, %v537_v14  ;;  %v670_v19 = vmul.bf16 1056980736, %v2851_v15 }
  0xf4   :  { %v611_v20 = vmul.bf16 1056980736, %v579_v16  ;;  %v703_v26 = vadd.bf16 1056980736, %v671_v17 }
  0xf5   :  { %v610_v22 = vmul.bf16 1056980736, %v578_v18  ;;  %v2513_v23 = vpop.f32.mrb[12].mxu0  ;;  %v702_v24 = vadd.bf16 1056980736, %v670_v19 }
  0xf6   :  { %2856 = vtanh.bf16 %v611_v20  ;;  %v326_v25 = vpop.f32.mrb[13].mxu0 }
  0xf7   :  { %2858 = vtanh.bf16 %v610_v22  ;;  %v2514_v27 = vpop.f32.mrb[14].mxu0  ;;  %2579 = vmatprep.mubr.bf16.mxu1 %v702_v24 }
  0xf8   :  { %v540_v28 = vpack.c.bf16 %v2514_v27, %v2513_v23  ;;  %v329_v29 = vpop.f32.mrb[15].mxu0  ;;  %2580 = vmatmul.mubr.bf16.vlgmr.msra.gmra.mrb[0].mxu1 %v703_v26 }
  0xf9   :  { %v2853_v31 = vpop.eup %2852  ;;  %v539_v32 = vpack.c.bf16 %v329_v29, %v326_v25 }
  0xfa   :  { %v2855_v33 = vpop.eup %2854  ;;  %v581_v34 = vadd.bf16 %v3377_v50, %v540_v28  ;;  %v673_v35 = vmul.bf16 1056980736, %v2853_v31 }
  0xfb   :  { %v580_v36 = vadd.bf16 %v3377_v50, %v539_v32  ;;  %v672_v37 = vmul.bf16 1056980736, %v2855_v33 }
  0xfc   :  { %v613_v38 = vmul.bf16 1056980736, %v581_v34  ;;  %v705_v44 = vadd.bf16 1056980736, %v673_v35 }
  0xfd   :  { %v612_v40 = vmul.bf16 1056980736, %v580_v36  ;;  %v2517_v41 = vpop.f32.mrb[16].mxu0  ;;  %v704_v42 = vadd.bf16 1056980736, %v672_v37 }
  0xfe   :  { %2860 = vtanh.bf16 %v613_v38  ;;  %v342_v43 = vpop.f32.mrb[17].mxu0 }
  0xff   :  { %2862 = vtanh.bf16 %v612_v40  ;;  %v2518_v45 = vpop.f32.mrb[18].mxu0  ;;  %2583 = vmatprep.mubr.bf16.mxu1 %v704_v42 }
 0x100   :  { %v542_v46 = vpack.c.bf16 %v2518_v45, %v2517_v41  ;;  %v345_v48 = vpop.f32.mrb[19].mxu0  ;;  %2584 = vmatmul.mubr.bf16.gmra.mrb[4].mxu1 %v705_v44 }
 0x101   :  { %v2857_v51 = vpop.eup %2856  ;;  %v541_v52 = vpack.c.bf16 %v345_v48, %v342_v43 }
 0x102   :  { %v2859_v53 = vpop.eup %2858  ;;  %v583_v54 = vadd.bf16 %v3377_v50, %v542_v46  ;;  %v675_v55 = vmul.bf16 1056980736, %v2857_v51 }
 0x103   :  { %v582_v56 = vadd.bf16 %v3377_v50, %v541_v52  ;;  %v674_v57 = vmul.bf16 1056980736, %v2859_v53 }
 0x104   :  { %v615_v58 = vmul.bf16 1056980736, %v583_v54  ;;  %v707_v63 = vadd.bf16 1056980736, %v675_v55 }
 0x105   :  { %v614_v59 = vmul.bf16 1056980736, %v582_v56  ;;  %v2521_v60 = vpop.f32.mrb[20].mxu0  ;;  %v706_v61 = vadd.bf16 1056980736, %v674_v57 }
 0x106   :  { %2864 = vtanh.bf16 %v615_v58  ;;  %v358_v62 = vpop.f32.mrb[21].mxu0 }
 0x107   :  { %2866 = vtanh.bf16 %v614_v59  ;;  %v2522_v0 = vpop.f32.mrb[22].mxu0  ;;  %2587 = vmatprep.mubr.bf16.mxu1 %v706_v61 }
 0x108   :  { %v544_v1 = vpack.c.bf16 %v2522_v0, %v2521_v60  ;;  %v361_v2 = vpop.f32.mrb[23].mxu0  ;;  %2588 = vmatmul.mubr.bf16.gmra.mrb[8].mxu1 %v707_v63 }
 0x109   :  { %v2861_v3 = vpop.eup %2860  ;;  %v543_v4 = vpack.c.bf16 %v361_v2, %v358_v62 }
 0x10a   :  { %v2863_v5 = vpop.eup %2862  ;;  %v585_v6 = vadd.bf16 %v3377_v50, %v544_v1  ;;  %v677_v7 = vmul.bf16 1056980736, %v2861_v3 }
 0x10b   :  { %v584_v8 = vadd.bf16 %v3377_v50, %v543_v4  ;;  %v676_v9 = vmul.bf16 1056980736, %v2863_v5 }
 0x10c   :  { %v617_v10 = vmul.bf16 1056980736, %v585_v6  ;;  %v709_v15 = vadd.bf16 1056980736, %v677_v7 }
 0x10d   :  { %v616_v11 = vmul.bf16 1056980736, %v584_v8  ;;  %v2525_v12 = vpop.f32.mrb[24].mxu0  ;;  %v708_v13 = vadd.bf16 1056980736, %v676_v9 }
 0x10e   :  { %2868 = vtanh.bf16 %v617_v10  ;;  %v374_v14 = vpop.f32.mrb[25].mxu0 }
 0x10f   :  { %2870 = vtanh.bf16 %v616_v11  ;;  %v2526_v16 = vpop.f32.mrb[26].mxu0  ;;  %2591 = vmatprep.mubr.bf16.mxu1 %v708_v13 }
 0x110   :  { %v546_v17 = vpack.c.bf16 %v2526_v16, %v2525_v12  ;;  %v377_v18 = vpop.f32.mrb[27].mxu0  ;;  %2592 = vmatmul.mubr.bf16.gmra.mrb[12].mxu1 %v709_v15 }
 0x111   :  { %v2865_v19 = vpop.eup %2864  ;;  %v545_v20 = vpack.c.bf16 %v377_v18, %v374_v14 }
 0x112   :  { %v2867_v21 = vpop.eup %2866  ;;  %v587_v22 = vadd.bf16 %v3377_v50, %v546_v17  ;;  %v679_v23 = vmul.bf16 1056980736, %v2865_v19 }
 0x113   :  { %v586_v24 = vadd.bf16 %v3377_v50, %v545_v20  ;;  %v678_v25 = vmul.bf16 1056980736, %v2867_v21 }
 0x114   :  { %v619_v26 = vmul.bf16 1056980736, %v587_v22  ;;  %v711_v31 = vadd.bf16 1056980736, %v679_v23 }
 0x115   :  { %v618_v27 = vmul.bf16 1056980736, %v586_v24  ;;  %v2529_v28 = vpop.f32.mrb[28].mxu0  ;;  %v710_v29 = vadd.bf16 1056980736, %v678_v25 }
 0x116   :  { %2872 = vtanh.bf16 %v619_v26  ;;  %v390_v30 = vpop.f32.mrb[29].mxu0 }
 0x117   :  { %2874 = vtanh.bf16 %v618_v27  ;;  %v2530_v32 = vpop.f32.mrb[30].mxu0  ;;  %2595 = vmatprep.mubr.bf16.mxu1 %v710_v29 }
 0x118   :  { %v548_v33 = vpack.c.bf16 %v2530_v32, %v2529_v28  ;;  %v393_v34 = vpop.f32.mrb[31].mxu0  ;;  %2596 = vmatmul.mubr.bf16.gmra.mrb[16].mxu1 %v711_v31 }
 0x119   :  { %v2869_v35 = vpop.eup %2868  ;;  %v547_v36 = vpack.c.bf16 %v393_v34, %v390_v30 }
 0x11a   :  { %v2871_v37 = vpop.eup %2870  ;;  %v589_v38 = vadd.bf16 %v3377_v50, %v548_v33  ;;  %v681_v39 = vmul.bf16 1056980736, %v2869_v35 }
 0x11b   :  { %v588_v40 = vadd.bf16 %v3377_v50, %v547_v36  ;;  %v680_v41 = vmul.bf16 1056980736, %v2871_v37 }
 0x11c   :  { %v621_v42 = vmul.bf16 1056980736, %v589_v38  ;;  %v713_v48 = vadd.bf16 1056980736, %v681_v39 }
 0x11d   :  { %v620_v43 = vmul.bf16 1056980736, %v588_v40  ;;  %v2533_v44 = vpop.f32.mrb[32].mxu0  ;;  %v712_v45 = vadd.bf16 1056980736, %v680_v41 }
 0x11e   :  { %2876 = vtanh.bf16 %v621_v42  ;;  %v406_v46 = vpop.f32.mrb[33].mxu0 }
 0x11f   :  { %2878 = vtanh.bf16 %v620_v43  ;;  %v2534_v49 = vpop.f32.mrb[34].mxu0  ;;  %2599 = vmatprep.mubr.bf16.mxu1 %v712_v45 }
 0x120   :  { %v550_v51 = vpack.c.bf16 %v2534_v49, %v2533_v44  ;;  %v409_v52 = vpop.f32.mrb[35].mxu0  ;;  %2600 = vmatmul.mubr.bf16.gmra.mrb[20].mxu1 %v713_v48 }
 0x121   :  { %v2873_v53 = vpop.eup %2872  ;;  %v549_v54 = vpack.c.bf16 %v409_v52, %v406_v46 }
 0x122   :  { %v2875_v55 = vpop.eup %2874  ;;  %v591_v56 = vadd.bf16 %v3377_v50, %v550_v51  ;;  %v683_v57 = vmul.bf16 1056980736, %v2873_v53 }
 0x123   :  { %v590_v58 = vadd.bf16 %v3377_v50, %v549_v54  ;;  %v682_v59 = vmul.bf16 1056980736, %v2875_v55 }
 0x124   :  { %v623_v60 = vmul.bf16 1056980736, %v591_v56  ;;  %v715_v1 = vadd.bf16 1056980736, %v683_v57 }
 0x125   :  { %v622_v61 = vmul.bf16 1056980736, %v590_v58  ;;  %v2537_v62 = vpop.f32.mrb[36].mxu0  ;;  %v714_v63 = vadd.bf16 1056980736, %v682_v59 }
 0x126   :  { %2880 = vtanh.bf16 %v623_v60  ;;  %v422_v0 = vpop.f32.mrb[37].mxu0 }
 0x127   :  { %2882 = vtanh.bf16 %v622_v61  ;;  %v2538_v2 = vpop.f32.mrb[38].mxu0  ;;  %2603 = vmatprep.mubr.bf16.mxu1 %v714_v63 }
 0x128   :  { %v552_v3 = vpack.c.bf16 %v2538_v2, %v2537_v62  ;;  %v425_v4 = vpop.f32.mrb[39].mxu0  ;;  %2604 = vmatmul.mubr.bf16.gmra.mrb[24].mxu1 %v715_v1 }
 0x129   :  { %v2877_v5 = vpop.eup %2876  ;;  %v551_v6 = vpack.c.bf16 %v425_v4, %v422_v0 }
 0x12a   :  { %v2879_v7 = vpop.eup %2878  ;;  %v593_v8 = vadd.bf16 %v3377_v50, %v552_v3  ;;  %v685_v9 = vmul.bf16 1056980736, %v2877_v5 }
 0x12b   :  { %v592_v10 = vadd.bf16 %v3377_v50, %v551_v6  ;;  %v684_v11 = vmul.bf16 1056980736, %v2879_v7 }
 0x12c   :  { %v625_v12 = vmul.bf16 1056980736, %v593_v8  ;;  %v717_v17 = vadd.bf16 1056980736, %v685_v9 }
 0x12d   :  { %v624_v13 = vmul.bf16 1056980736, %v592_v10  ;;  %v2541_v14 = vpop.f32.mrb[40].mxu0  ;;  %v716_v15 = vadd.bf16 1056980736, %v684_v11 }
 0x12e   :  { %2884 = vtanh.bf16 %v625_v12  ;;  %v438_v16 = vpop.f32.mrb[41].mxu0 }
 0x12f   :  { %2886 = vtanh.bf16 %v624_v13  ;;  %v2542_v18 = vpop.f32.mrb[42].mxu0  ;;  %2607 = vmatprep.mubr.bf16.mxu1 %v716_v15 }
 0x130   :  { %v554_v19 = vpack.c.bf16 %v2542_v18, %v2541_v14  ;;  %v441_v20 = vpop.f32.mrb[43].mxu0  ;;  %2608 = vmatmul.mubr.bf16.gmra.mrb[28].mxu1 %v717_v17 }
 0x131   :  { %v2881_v21 = vpop.eup %2880  ;;  %v553_v22 = vpack.c.bf16 %v441_v20, %v438_v16 }
 0x132   :  { %v2883_v23 = vpop.eup %2882  ;;  %v595_v24 = vadd.bf16 %v3377_v50, %v554_v19  ;;  %v687_v25 = vmul.bf16 1056980736, %v2881_v21 }
 0x133   :  { %v594_v26 = vadd.bf16 %v3377_v50, %v553_v22  ;;  %v686_v27 = vmul.bf16 1056980736, %v2883_v23 }
 0x134   :  { %v627_v28 = vmul.bf16 1056980736, %v595_v24  ;;  %v719_v33 = vadd.bf16 1056980736, %v687_v25 }
 0x135   :  { %v626_v29 = vmul.bf16 1056980736, %v594_v26  ;;  %v2545_v30 = vpop.f32.mrb[44].mxu0  ;;  %v718_v31 = vadd.bf16 1056980736, %v686_v27 }
 0x136   :  { %2888 = vtanh.bf16 %v627_v28  ;;  %v454_v32 = vpop.f32.mrb[45].mxu0 }
 0x137   :  { %2890 = vtanh.bf16 %v626_v29  ;;  %v2546_v34 = vpop.f32.mrb[46].mxu0  ;;  %2611 = vmatprep.mubr.bf16.mxu1 %v718_v31 }
 0x138   :  { %v556_v35 = vpack.c.bf16 %v2546_v34, %v2545_v30  ;;  %v457_v36 = vpop.f32.mrb[47].mxu0  ;;  %2612 = vmatmul.mubr.bf16.gmra.mrb[32].mxu1 %v719_v33 }
 0x139   :  { %v2885_v37 = vpop.eup %2884  ;;  %v555_v38 = vpack.c.bf16 %v457_v36, %v454_v32 }
 0x13a   :  { %v2887_v39 = vpop.eup %2886  ;;  %v597_v40 = vadd.bf16 %v3377_v50, %v556_v35  ;;  %v689_v41 = vmul.bf16 1056980736, %v2885_v37 }
 0x13b   :  { %v596_v42 = vadd.bf16 %v3377_v50, %v555_v38  ;;  %v688_v43 = vmul.bf16 1056980736, %v2887_v39 }
 0x13c   :  { %v629_v44 = vmul.bf16 1056980736, %v597_v40  ;;  %v721_v51 = vadd.bf16 1056980736, %v689_v41 }
 0x13d   :  { %v628_v45 = vmul.bf16 1056980736, %v596_v42  ;;  %v2549_v46 = vpop.f32.mrb[48].mxu0  ;;  %v720_v48 = vadd.bf16 1056980736, %v688_v43 }
 0x13e   :  { %2892 = vtanh.bf16 %v629_v44  ;;  %v470_v49 = vpop.f32.mrb[49].mxu0 }
 0x13f   :  { %2894 = vtanh.bf16 %v628_v45  ;;  %v2550_v52 = vpop.f32.mrb[50].mxu0  ;;  %2615 = vmatprep.mubr.bf16.mxu1 %v720_v48 }
 0x140   :  { %v558_v53 = vpack.c.bf16 %v2550_v52, %v2549_v46  ;;  %v473_v54 = vpop.f32.mrb[51].mxu0  ;;  %2616 = vmatmul.mubr.bf16.gmra.mrb[36].mxu1 %v721_v51  ;;  %v2839_v52 = vld [vmem:[%s3621_s5 + $0x38] sm:$0xff]  }
 0x141   :  { %v2889_v55 = vpop.eup %2888  ;;  %v557_v56 = vpack.c.bf16 %v473_v54, %v470_v49  ;;  %2657 = vmatprep.subr.bf16.mxu0 %v2839_v52 }
 0x142   :  { %v2891_v57 = vpop.eup %2890  ;;  %v599_v58 = vadd.bf16 %v3377_v50, %v558_v53  ;;  %v691_v59 = vmul.bf16 1056980736, %v2889_v55  ;;  %2658 = vmatpush3.bf16.msra.mxu0 %v2839_v52 }
 0x143   :  { %v598_v60 = vadd.bf16 %v3377_v50, %v557_v56  ;;  %v690_v61 = vmul.bf16 1056980736, %v2891_v57 }
 0x144   :  { %v631_v62 = vmul.bf16 1056980736, %v599_v58  ;;  %v723_v3 = vadd.bf16 1056980736, %v691_v59 }
 0x145   :  { %v630_v63 = vmul.bf16 1056980736, %v598_v60  ;;  %v2553_v0 = vpop.f32.mrb[52].mxu0  ;;  %v722_v1 = vadd.bf16 1056980736, %v690_v61 }
 0x146   :  { %2896 = vtanh.bf16 %v631_v62  ;;  %v486_v2 = vpop.f32.mrb[53].mxu0 }
 0x147   :  { %2898 = vtanh.bf16 %v630_v63  ;;  %v2554_v4 = vpop.f32.mrb[54].mxu0  ;;  %2619 = vmatprep.mubr.bf16.mxu1 %v722_v1 }
 0x148   :  { %v560_v5 = vpack.c.bf16 %v2554_v4, %v2553_v0  ;;  %v489_v6 = vpop.f32.mrb[55].mxu0  ;;  %2620 = vmatmul.mubr.bf16.gmra.mrb[40].mxu1 %v723_v3  ;;  %v1119_v0 = vld [vmem:[%s3620_s4] sm:$0x1] }
 0x149   :  { %v2893_v7 = vpop.eup %2892  ;;  %v559_v8 = vpack.c.bf16 %v489_v6, %v486_v2  ;;  %v1120_v1 = vpack.c.bf16 %v1119_v0, %v1119_v0  ;;  %v2845_v0 = vld [vmem:[%s3623_s7 + $0x28] sm:$0xff]  }
 0x14a   :  { %v2895_v9 = vpop.eup %2894  ;;  %v601_v10 = vadd.bf16 %v3377_v50, %v560_v5  ;;  %v693_v11 = vmul.bf16 1056980736, %v2893_v7 }
 0x14b   :  { %v600_v12 = vadd.bf16 %v3377_v50, %v559_v8  ;;  %v692_v13 = vmul.bf16 1056980736, %v2895_v9  ;;  %v1122_v2 = vpack.i.b16 %v1120_v1, %v1120_v1 }
 0x14c   :  { %v633_v14 = vmul.bf16 1056980736, %v601_v10  ;;  %v725_v19 = vadd.bf16 1056980736, %v693_v11 }
 0x14d   :  { %v632_v15 = vmul.bf16 1056980736, %v600_v12  ;;  %v2557_v16 = vpop.f32.mrb[56].mxu0  ;;  %v724_v17 = vadd.bf16 1056980736, %v692_v13  ;;  %v3439_v5 = vrot.slane %v1122_v2, %v3374_v47 }
 0x14e   :  { %2900 = vtanh.bf16 %v633_v14  ;;  %v502_v18 = vpop.f32.mrb[57].mxu0 }
 0x14f   :  { %2902 = vtanh.bf16 %v632_v15  ;;  %v2558_v20 = vpop.f32.mrb[58].mxu0  ;;  %2623 = vmatprep.mubr.bf16.mxu1 %v724_v17 }
 0x150   :  { %v562_v21 = vpack.c.bf16 %v2558_v20, %v2557_v16  ;;  %v505_v22 = vpop.f32.mrb[59].mxu0  ;;  %2624 = vmatmul.mubr.bf16.gmra.mrb[44].mxu1 %v725_v19  ;;  %v2840_v19 = vld [vmem:[%s3623_s7] sm:$0xff]  }
 0x151   :  { %v2897_v23 = vpop.eup %2896  ;;  %v561_v24 = vpack.c.bf16 %v505_v22, %v502_v18  ;;  %2803 = vmatprep.subr.bf16.mxu1 %v2840_v19  ;;  %2723 = vmatprep.subr.bf16.mxu0 %v2840_v19 }
 0x152   :  { %v2899_v25 = vpop.eup %2898  ;;  %v603_v26 = vadd.bf16 %v3377_v50, %v562_v21  ;;  %v695_v27 = vmul.bf16 1056980736, %v2897_v23  ;;  %2811 = vmatpush3.bf16.msra.mxu1 %v2840_v19 }
 0x153   :  { %v602_v28 = vadd.bf16 %v3377_v50, %v561_v24  ;;  %v694_v29 = vmul.bf16 1056980736, %v2899_v25 }
 0x154   :  { %v635_v30 = vmul.bf16 1056980736, %v603_v26  ;;  %v727_v35 = vadd.bf16 1056980736, %v695_v27 }
 0x155   :  { %v634_v31 = vmul.bf16 1056980736, %v602_v28  ;;  %v2561_v32 = vpop.f32.mrb[60].mxu0  ;;  %v726_v33 = vadd.bf16 1056980736, %v694_v29 }
 0x156   :  { %2904 = vtanh.bf16 %v635_v30  ;;  %v518_v34 = vpop.f32.mrb[61].mxu0  ;;  %v2841_v30 = vld [vmem:[%s3623_s7 + $0x8] sm:$0xff]  }
 0x157   :  { %2906 = vtanh.bf16 %v634_v31  ;;  %v2562_v36 = vpop.f32.mrb[62].mxu0  ;;  %2627 = vmatprep.mubr.bf16.mxu1 %v726_v33  ;;  %2804 = vmatprep.subr.bf16.mxu1 %v2841_v30 }
 0x158   :  { %v564_v37 = vpack.c.bf16 %v2562_v36, %v2561_v32  ;;  %v521_v38 = vpop.f32.mrb[63].mxu0  ;;  %2628 = vmatmul.mubr.bf16.gmra.mrb[48].mxu1 %v727_v35  ;;  %v2842_v36 = vld [vmem:[%s3623_s7 + $0x10] sm:$0xff]  }
 0x159   :  { %v2901_v39 = vpop.eup %2900  ;;  %v563_v40 = vpack.c.bf16 %v521_v38, %v518_v34  ;;  %2812 = vmatpush3.bf16.msra.mxu1 %v2841_v30 }
 0x15a   :  { %v2903_v41 = vpop.eup %2902  ;;  %v605_v42 = vadd.bf16 %v3377_v50, %v564_v37  ;;  %v697_v43 = vmul.bf16 1056980736, %v2901_v39  ;;  %2805 = vmatprep.subr.bf16.mxu1 %v2842_v36 }
 0x15b   :  { %v604_v44 = vadd.bf16 %v3377_v50, %v563_v40  ;;  %v696_v45 = vmul.bf16 1056980736, %v2903_v41 }
 0x15c   :  { %v637_v46 = vmul.bf16 1056980736, %v605_v42  ;;  %v729_v51 = vadd.bf16 1056980736, %v697_v43 }
 0x15d   :  { %v636_v48 = vmul.bf16 1056980736, %v604_v44  ;;  %v728_v49 = vadd.bf16 1056980736, %v696_v45  ;;  %v2843_v45 = vld [vmem:[%s3623_s7 + $0x18] sm:$0xff]   ;;  %2813 = vmatpush3.bf16.msra.mxu1 %v2842_v36 }
 0x15e   :  { %2908 = vtanh.bf16 %v637_v46  ;;  %2806 = vmatprep.subr.bf16.mxu1 %v2843_v45 }
 0x15f   :  { %2910 = vtanh.bf16 %v636_v48  ;;  %2631 = vmatprep.mubr.bf16.mxu1 %v728_v49 }
 0x160   :  { %2632 = vmatmul.mubr.bf16.gmra.mrb[52].mxu1 %v729_v51 }
 0x161   :  { %v2905_v53 = vpop.eup %2904  ;;  %2814 = vmatpush3.bf16.msra.mxu1 %v2843_v45 }
 0x162   :  { %v2907_v54 = vpop.eup %2906  ;;  %v699_v55 = vmul.bf16 1056980736, %v2905_v53 }
 0x163   :  { %v698_v56 = vmul.bf16 1056980736, %v2907_v54 }
 0x164   :  { %v731_v57 = vadd.bf16 1056980736, %v699_v55 }
 0x165   :  { %v730_v50 = vadd.bf16 1056980736, %v698_v56  ;;  %v2844_v56 = vld [vmem:[%s3623_s7 + $0x20] sm:$0xff]  }
 0x166   :  { %2807 = vmatprep.subr.bf16.mxu1 %v2844_v56 }
 0x167   :  { %2635 = vmatprep.mubr.bf16.mxu1 %v730_v50  ;;  %2815 = vmatpush3.bf16.msra.mxu1 %v2844_v56 }
 0x168   :  { %2636 = vmatmul.mubr.bf16.gmra.mrb[56].mxu1 %v731_v57  ;;  %2808 = vmatprep.subr.bf16.mxu1 %v2845_v0 }
 0x169   :  { %v2909_v58 = vpop.eup %2908 }
 0x16a   :  { %v2911_v59 = vpop.eup %2910  ;;  %v701_v60 = vmul.bf16 1056980736, %v2909_v58 }
 0x16b   :  { %v700_v61 = vmul.bf16 1056980736, %v2911_v59  ;;  %2816 = vmatpush3.bf16.msra.mxu1 %v2845_v0 }
 0x16c   :  { %v733_v63 = vadd.bf16 1056980736, %v701_v60 }
 0x16d   :  { %v732_v62 = vadd.bf16 1056980736, %v700_v61 }
 0x16f   :  { %2639 = vmatprep.mubr.bf16.mxu1 %v732_v62 }
 0x170   :  { %2640 = vmatmul.mubr.bf16.gmra.mrb[60].mxu1 %v733_v63 }
 0x1cb   :  { %v2581_v3 = vpop.f32.mrb[0].mxu1 }
 0x1cc   :  { %v832_v4 = vpop.f32.mrb[1].mxu1 }
 0x1cd   :  { %v2582_v6 = vpop.f32.mrb[2].mxu1 }
 0x1ce   :  { %v1088_v7 = vpack.c.bf16 %v2582_v6, %v2581_v3  ;;  %v835_v8 = vpop.f32.mrb[3].mxu1 }
 0x1cf   :  { %v1087_v9 = vpack.c.bf16 %v835_v8, %v832_v4 }
 0x1d0   :  { %v1129_v10 = vadd.bf16 %v3439_v5, %v1088_v7 }
 0x1d1   :  { %v1128_v11 = vadd.bf16 %v3439_v5, %v1087_v9 }
 0x1d2   :  { %v1161_v12 = vmul.bf16 1056980736, %v1129_v10 }
 0x1d3   :  { %v1160_v13 = vmul.bf16 1056980736, %v1128_v11  ;;  %v2585_v14 = vpop.f32.mrb[4].mxu1 }
 0x1d4   :  { %2912 = vtanh.bf16 %v1161_v12  ;;  %v848_v15 = vpop.f32.mrb[5].mxu1 }
 0x1d5   :  { %2914 = vtanh.bf16 %v1160_v13  ;;  %v2586_v16 = vpop.f32.mrb[6].mxu1 }
 0x1d6   :  { %v1090_v17 = vpack.c.bf16 %v2586_v16, %v2585_v14  ;;  %v851_v18 = vpop.f32.mrb[7].mxu1 }
 0x1d7   :  { %v1089_v20 = vpack.c.bf16 %v851_v18, %v848_v15 }
 0x1d8   :  { %v1131_v21 = vadd.bf16 %v3439_v5, %v1090_v17 }
 0x1d9   :  { %v1130_v22 = vadd.bf16 %v3439_v5, %v1089_v20 }
 0x1da   :  { %v1163_v23 = vmul.bf16 1056980736, %v1131_v21 }
 0x1db   :  { %v1162_v24 = vmul.bf16 1056980736, %v1130_v22  ;;  %v2589_v25 = vpop.f32.mrb[8].mxu1 }
 0x1dc   :  { %2916 = vtanh.bf16 %v1163_v23  ;;  %v864_v26 = vpop.f32.mrb[9].mxu1 }
 0x1dd   :  { %2918 = vtanh.bf16 %v1162_v24  ;;  %v2590_v27 = vpop.f32.mrb[10].mxu1 }
 0x1de   :  { %v1092_v28 = vpack.c.bf16 %v2590_v27, %v2589_v25  ;;  %v867_v29 = vpop.f32.mrb[11].mxu1 }
 0x1df   :  { %v2913_v31 = vpop.eup %2912  ;;  %v1091_v32 = vpack.c.bf16 %v867_v29, %v864_v26 }
 0x1e0   :  { %v2915_v33 = vpop.eup %2914  ;;  %v1225_v34 = vmul.bf16 1056980736, %v2913_v31  ;;  %v1133_v35 = vadd.bf16 %v3439_v5, %v1092_v28 }
 0x1e1   :  { %v1132_v37 = vadd.bf16 %v3439_v5, %v1091_v32  ;;  %v1224_v38 = vmul.bf16 1056980736, %v2915_v33 }
 0x1e2   :  { %v1165_v39 = vmul.bf16 1056980736, %v1133_v35  ;;  %v1257_v43 = vadd.bf16 1056980736, %v1225_v34 }
 0x1e3   :  { %v1164_v40 = vmul.bf16 1056980736, %v1132_v37  ;;  %v2593_v41 = vpop.f32.mrb[12].mxu1  ;;  %v1256_v42 = vadd.bf16 1056980736, %v1224_v38 }
 0x1e4   :  { %2920 = vtanh.bf16 %v1165_v39  ;;  %v880_v44 = vpop.f32.mrb[13].mxu1 }
 0x1e5   :  { %2922 = vtanh.bf16 %v1164_v40  ;;  %v2594_v46 = vpop.f32.mrb[14].mxu1  ;;  %2659 = vmatprep.mubr.bf16.mxu0 %v1256_v42 }
 0x1e6   :  { %v1094_v48 = vpack.c.bf16 %v2594_v46, %v2593_v41  ;;  %v883_v49 = vpop.f32.mrb[15].mxu1  ;;  %2660 = vmatmul.mubr.bf16.vlgmr.msra.gmra.mrb[64].mxu0 %v1257_v43 }
 0x1e7   :  { %v2917_v51 = vpop.eup %2916  ;;  %v1093_v52 = vpack.c.bf16 %v883_v49, %v880_v44  ;;  %2724 = vmatpush3.bf16.msra.mxu0 %v2840_v19 }
 0x1e8   :  { %v2919_v53 = vpop.eup %2918  ;;  %v1135_v54 = vadd.bf16 %v3439_v5, %v1094_v48  ;;  %v1227_v55 = vmul.bf16 1056980736, %v2917_v51  ;;  %2725 = vmatprep.subr.bf16.mxu0 %v2841_v30 }
 0x1e9   :  { %v1134_v50 = vadd.bf16 %v3439_v5, %v1093_v52  ;;  %v1226_v57 = vmul.bf16 1056980736, %v2919_v53 }
 0x1ea   :  { %v1167_v58 = vmul.bf16 1056980736, %v1135_v54  ;;  %v1259_v63 = vadd.bf16 1056980736, %v1227_v55 }
 0x1eb   :  { %v1166_v59 = vmul.bf16 1056980736, %v1134_v50  ;;  %v2597_v60 = vpop.f32.mrb[16].mxu1  ;;  %v1258_v61 = vadd.bf16 1056980736, %v1226_v57  ;;  %2726 = vmatpush3.bf16.msra.mxu0 %v2841_v30 }
 0x1ec   :  { %2924 = vtanh.bf16 %v1167_v58  ;;  %v896_v62 = vpop.f32.mrb[17].mxu1  ;;  %2727 = vmatprep.subr.bf16.mxu0 %v2842_v36 }
 0x1ed   :  { %2926 = vtanh.bf16 %v1166_v59  ;;  %v2598_v1 = vpop.f32.mrb[18].mxu1  ;;  %2663 = vmatprep.mubr.bf16.mxu0 %v1258_v61 }
 0x1ee   :  { %v1096_v2 = vpack.c.bf16 %v2598_v1, %v2597_v60  ;;  %v899_v3 = vpop.f32.mrb[19].mxu1  ;;  %2664 = vmatmul.mubr.bf16.gmra.mrb[68].mxu0 %v1259_v63 }
 0x1ef   :  { %v2921_v4 = vpop.eup %2920  ;;  %v1095_v6 = vpack.c.bf16 %v899_v3, %v896_v62  ;;  %2728 = vmatpush3.bf16.msra.mxu0 %v2842_v36 }
 0x1f0   :  { %v2923_v7 = vpop.eup %2922  ;;  %v1137_v8 = vadd.bf16 %v3439_v5, %v1096_v2  ;;  %v1229_v9 = vmul.bf16 1056980736, %v2921_v4  ;;  %2729 = vmatprep.subr.bf16.mxu0 %v2843_v45 }
 0x1f1   :  { %v1136_v10 = vadd.bf16 %v3439_v5, %v1095_v6  ;;  %v1228_v11 = vmul.bf16 1056980736, %v2923_v7 }
 0x1f2   :  { %v1169_v12 = vmul.bf16 1056980736, %v1137_v8  ;;  %v1261_v17 = vadd.bf16 1056980736, %v1229_v9 }
 0x1f3   :  { %v1168_v13 = vmul.bf16 1056980736, %v1136_v10  ;;  %v2601_v14 = vpop.f32.mrb[20].mxu1  ;;  %v1260_v15 = vadd.bf16 1056980736, %v1228_v11  ;;  %2730 = vmatpush3.bf16.msra.mxu0 %v2843_v45 }
 0x1f4   :  { %2928 = vtanh.bf16 %v1169_v12  ;;  %v912_v16 = vpop.f32.mrb[21].mxu1  ;;  %2731 = vmatprep.subr.bf16.mxu0 %v2844_v56 }
 0x1f5   :  { %2930 = vtanh.bf16 %v1168_v13  ;;  %v2602_v18 = vpop.f32.mrb[22].mxu1  ;;  %2667 = vmatprep.mubr.bf16.mxu0 %v1260_v15 }
 0x1f6   :  { %v1098_v19 = vpack.c.bf16 %v2602_v18, %v2601_v14  ;;  %v915_v20 = vpop.f32.mrb[23].mxu1  ;;  %2668 = vmatmul.mubr.bf16.gmra.mrb[72].mxu0 %v1261_v17 }
 0x1f7   :  { %v2925_v21 = vpop.eup %2924  ;;  %v1097_v22 = vpack.c.bf16 %v915_v20, %v912_v16  ;;  %2732 = vmatpush3.bf16.msra.mxu0 %v2844_v56 }
 0x1f8   :  { %v2927_v23 = vpop.eup %2926  ;;  %v1139_v24 = vadd.bf16 %v3439_v5, %v1098_v19  ;;  %v1231_v25 = vmul.bf16 1056980736, %v2925_v21  ;;  %2733 = vmatprep.subr.bf16.mxu0 %v2845_v0 }
 0x1f9   :  { %v1138_v26 = vadd.bf16 %v3439_v5, %v1097_v22  ;;  %v1230_v27 = vmul.bf16 1056980736, %v2927_v23 }
 0x1fa   :  { %v1171_v28 = vmul.bf16 1056980736, %v1139_v24  ;;  %v1263_v33 = vadd.bf16 1056980736, %v1231_v25 }
 0x1fb   :  { %v1170_v29 = vmul.bf16 1056980736, %v1138_v26  ;;  %v2605_v30 = vpop.f32.mrb[24].mxu1  ;;  %v1262_v31 = vadd.bf16 1056980736, %v1230_v27  ;;  %2734 = vmatpush3.bf16.msra.mxu0 %v2845_v0 }
 0x1fc   :  { %2932 = vtanh.bf16 %v1171_v28  ;;  %v928_v32 = vpop.f32.mrb[25].mxu1 }
 0x1fd   :  { %2934 = vtanh.bf16 %v1170_v29  ;;  %v2606_v34 = vpop.f32.mrb[26].mxu1  ;;  %2671 = vmatprep.mubr.bf16.mxu0 %v1262_v31 }
 0x1fe   :  { %v1100_v35 = vpack.c.bf16 %v2606_v34, %v2605_v30  ;;  %v931_v36 = vpop.f32.mrb[27].mxu1  ;;  %2672 = vmatmul.mubr.bf16.gmra.mrb[76].mxu0 %v1263_v33 }
 0x1ff   :  { %v2929_v37 = vpop.eup %2928  ;;  %v1099_v38 = vpack.c.bf16 %v931_v36, %v928_v32 }
 0x200   :  { %v2931_v39 = vpop.eup %2930  ;;  %v1141_v40 = vadd.bf16 %v3439_v5, %v1100_v35  ;;  %v1233_v41 = vmul.bf16 1056980736, %v2929_v37 }
 0x201   :  { %v1140_v42 = vadd.bf16 %v3439_v5, %v1099_v38  ;;  %v1232_v43 = vmul.bf16 1056980736, %v2931_v39 }
 0x202   :  { %v1173_v44 = vmul.bf16 1056980736, %v1141_v40  ;;  %v1265_v51 = vadd.bf16 1056980736, %v1233_v41 }
 0x203   :  { %v1172_v45 = vmul.bf16 1056980736, %v1140_v42  ;;  %v2609_v46 = vpop.f32.mrb[28].mxu1  ;;  %v1264_v48 = vadd.bf16 1056980736, %v1232_v43 }
 0x204   :  { %2936 = vtanh.bf16 %v1173_v44  ;;  %v944_v49 = vpop.f32.mrb[29].mxu1 }
 0x205   :  { %2938 = vtanh.bf16 %v1172_v45  ;;  %v2610_v52 = vpop.f32.mrb[30].mxu1  ;;  %2675 = vmatprep.mubr.bf16.mxu0 %v1264_v48 }
 0x206   :  { %v1102_v53 = vpack.c.bf16 %v2610_v52, %v2609_v46  ;;  %v947_v54 = vpop.f32.mrb[31].mxu1  ;;  %2676 = vmatmul.mubr.bf16.gmra.mrb[80].mxu0 %v1265_v51 }
 0x207   :  { %v2933_v55 = vpop.eup %2932  ;;  %v1101_v56 = vpack.c.bf16 %v947_v54, %v944_v49 }
 0x208   :  { %v2935_v50 = vpop.eup %2934  ;;  %v1143_v57 = vadd.bf16 %v3439_v5, %v1102_v53  ;;  %v1235_v58 = vmul.bf16 1056980736, %v2933_v55 }
 0x209   :  { %v1142_v59 = vadd.bf16 %v3439_v5, %v1101_v56  ;;  %v1234_v60 = vmul.bf16 1056980736, %v2935_v50 }
 0x20a   :  { %v1175_v61 = vmul.bf16 1056980736, %v1143_v57  ;;  %v1267_v2 = vadd.bf16 1056980736, %v1235_v58 }
 0x20b   :  { %v1174_v62 = vmul.bf16 1056980736, %v1142_v59  ;;  %v2613_v63 = vpop.f32.mrb[32].mxu1  ;;  %v1266_v0 = vadd.bf16 1056980736, %v1234_v60 }
 0x20c   :  { %2940 = vtanh.bf16 %v1175_v61  ;;  %v960_v1 = vpop.f32.mrb[33].mxu1 }
 0x20d   :  { %2942 = vtanh.bf16 %v1174_v62  ;;  %v2614_v3 = vpop.f32.mrb[34].mxu1  ;;  %2679 = vmatprep.mubr.bf16.mxu0 %v1266_v0 }
 0x20e   :  { %v1104_v4 = vpack.c.bf16 %v2614_v3, %v2613_v63  ;;  %v963_v6 = vpop.f32.mrb[35].mxu1  ;;  %2680 = vmatmul.mubr.bf16.gmra.mrb[84].mxu0 %v1267_v2 }
 0x20f   :  { %v2937_v7 = vpop.eup %2936  ;;  %v1103_v8 = vpack.c.bf16 %v963_v6, %v960_v1 }
 0x210   :  { %v2939_v9 = vpop.eup %2938  ;;  %v1145_v10 = vadd.bf16 %v3439_v5, %v1104_v4  ;;  %v1237_v11 = vmul.bf16 1056980736, %v2937_v7 }
 0x211   :  { %v1144_v12 = vadd.bf16 %v3439_v5, %v1103_v8  ;;  %v1236_v13 = vmul.bf16 1056980736, %v2939_v9 }
 0x212   :  { %v1177_v14 = vmul.bf16 1056980736, %v1145_v10  ;;  %v1269_v19 = vadd.bf16 1056980736, %v1237_v11 }
 0x213   :  { %v1176_v15 = vmul.bf16 1056980736, %v1144_v12  ;;  %v2617_v16 = vpop.f32.mrb[36].mxu1  ;;  %v1268_v17 = vadd.bf16 1056980736, %v1236_v13 }
 0x214   :  { %2944 = vtanh.bf16 %v1177_v14  ;;  %v976_v18 = vpop.f32.mrb[37].mxu1 }
 0x215   :  { %2946 = vtanh.bf16 %v1176_v15  ;;  %v2618_v20 = vpop.f32.mrb[38].mxu1  ;;  %2683 = vmatprep.mubr.bf16.mxu0 %v1268_v17 }
 0x216   :  { %v1106_v21 = vpack.c.bf16 %v2618_v20, %v2617_v16  ;;  %v979_v22 = vpop.f32.mrb[39].mxu1  ;;  %2684 = vmatmul.mubr.bf16.gmra.mrb[88].mxu0 %v1269_v19 }
 0x217   :  { %v2941_v23 = vpop.eup %2940  ;;  %v1105_v24 = vpack.c.bf16 %v979_v22, %v976_v18 }
 0x218   :  { %v2943_v25 = vpop.eup %2942  ;;  %v1147_v26 = vadd.bf16 %v3439_v5, %v1106_v21  ;;  %v1239_v27 = vmul.bf16 1056980736, %v2941_v23 }
 0x219   :  { %v1146_v28 = vadd.bf16 %v3439_v5, %v1105_v24  ;;  %v1238_v29 = vmul.bf16 1056980736, %v2943_v25 }
 0x21a   :  { %v1179_v30 = vmul.bf16 1056980736, %v1147_v26  ;;  %v1271_v35 = vadd.bf16 1056980736, %v1239_v27 }
 0x21b   :  { %v1178_v31 = vmul.bf16 1056980736, %v1146_v28  ;;  %v2621_v32 = vpop.f32.mrb[40].mxu1  ;;  %v1270_v33 = vadd.bf16 1056980736, %v1238_v29 }
 0x21c   :  { %2948 = vtanh.bf16 %v1179_v30  ;;  %v992_v34 = vpop.f32.mrb[41].mxu1 }
 0x21d   :  { %2950 = vtanh.bf16 %v1178_v31  ;;  %v2622_v36 = vpop.f32.mrb[42].mxu1  ;;  %2687 = vmatprep.mubr.bf16.mxu0 %v1270_v33 }
 0x21e   :  { %v1108_v37 = vpack.c.bf16 %v2622_v36, %v2621_v32  ;;  %v995_v38 = vpop.f32.mrb[43].mxu1  ;;  %2688 = vmatmul.mubr.bf16.gmra.mrb[92].mxu0 %v1271_v35 }
 0x21f   :  { %v2945_v39 = vpop.eup %2944  ;;  %v1107_v40 = vpack.c.bf16 %v995_v38, %v992_v34 }
 0x220   :  { %v2947_v41 = vpop.eup %2946  ;;  %v1149_v42 = vadd.bf16 %v3439_v5, %v1108_v37  ;;  %v1241_v43 = vmul.bf16 1056980736, %v2945_v39 }
 0x221   :  { %v1148_v44 = vadd.bf16 %v3439_v5, %v1107_v40  ;;  %v1240_v45 = vmul.bf16 1056980736, %v2947_v41 }
 0x222   :  { %v1181_v46 = vmul.bf16 1056980736, %v1149_v42  ;;  %v1273_v53 = vadd.bf16 1056980736, %v1241_v43 }
 0x223   :  { %v1180_v48 = vmul.bf16 1056980736, %v1148_v44  ;;  %v2625_v49 = vpop.f32.mrb[44].mxu1  ;;  %v1272_v51 = vadd.bf16 1056980736, %v1240_v45 }
 0x224   :  { %2952 = vtanh.bf16 %v1181_v46  ;;  %v1008_v52 = vpop.f32.mrb[45].mxu1 }
 0x225   :  { %2954 = vtanh.bf16 %v1180_v48  ;;  %v2626_v54 = vpop.f32.mrb[46].mxu1  ;;  %2691 = vmatprep.mubr.bf16.mxu0 %v1272_v51 }
 0x226   :  { %v1110_v55 = vpack.c.bf16 %v2626_v54, %v2625_v49  ;;  %v1011_v56 = vpop.f32.mrb[47].mxu1  ;;  %2692 = vmatmul.mubr.bf16.gmra.mrb[96].mxu0 %v1273_v53 }
 0x227   :  { %v2949_v50 = vpop.eup %2948  ;;  %v1109_v57 = vpack.c.bf16 %v1011_v56, %v1008_v52 }
 0x228   :  { %v2951_v58 = vpop.eup %2950  ;;  %v1151_v59 = vadd.bf16 %v3439_v5, %v1110_v55  ;;  %v1243_v60 = vmul.bf16 1056980736, %v2949_v50 }
 0x229   :  { %v1150_v61 = vadd.bf16 %v3439_v5, %v1109_v57  ;;  %v1242_v62 = vmul.bf16 1056980736, %v2951_v58 }
 0x22a   :  { %v1183_v63 = vmul.bf16 1056980736, %v1151_v59  ;;  %v1275_v4 = vadd.bf16 1056980736, %v1243_v60 }
 0x22b   :  { %v1182_v0 = vmul.bf16 1056980736, %v1150_v61  ;;  %v2629_v1 = vpop.f32.mrb[48].mxu1  ;;  %v1274_v2 = vadd.bf16 1056980736, %v1242_v62 }
 0x22c   :  { %2956 = vtanh.bf16 %v1183_v63  ;;  %v1024_v3 = vpop.f32.mrb[49].mxu1 }
 0x22d   :  { %2958 = vtanh.bf16 %v1182_v0  ;;  %v2630_v6 = vpop.f32.mrb[50].mxu1  ;;  %2695 = vmatprep.mubr.bf16.mxu0 %v1274_v2  ;;  %v2846_v2 = vld [vmem:[%s3623_s7 + $0x30] sm:$0xff]  }
 0x22e   :  { %v1112_v7 = vpack.c.bf16 %v2630_v6, %v2629_v1  ;;  %v1027_v8 = vpop.f32.mrb[51].mxu1  ;;  %2696 = vmatmul.mubr.bf16.gmra.mrb[100].mxu0 %v1275_v4  ;;  %2809 = vmatprep.subr.bf16.mxu1 %v2846_v2 }
 0x22f   :  { %v2953_v9 = vpop.eup %2952  ;;  %v1111_v10 = vpack.c.bf16 %v1027_v8, %v1024_v3  ;;  %2735 = vmatprep.subr.bf16.mxu0 %v2846_v2  ;;  %2817 = vmatpush3.bf16.msra.mxu1 %v2846_v2 }
 0x230   :  { %v2955_v11 = vpop.eup %2954  ;;  %v1153_v12 = vadd.bf16 %v3439_v5, %v1112_v7  ;;  %v1245_v13 = vmul.bf16 1056980736, %v2953_v9  ;;  %2736 = vmatpush3.bf16.msra.mxu0 %v2846_v2 }
 0x231   :  { %v1152_v14 = vadd.bf16 %v3439_v5, %v1111_v10  ;;  %v1244_v15 = vmul.bf16 1056980736, %v2955_v11 }
 0x232   :  { %v1185_v16 = vmul.bf16 1056980736, %v1153_v12  ;;  %v1277_v21 = vadd.bf16 1056980736, %v1245_v13 }
 0x233   :  { %v1184_v17 = vmul.bf16 1056980736, %v1152_v14  ;;  %v2633_v18 = vpop.f32.mrb[52].mxu1  ;;  %v1276_v19 = vadd.bf16 1056980736, %v1244_v15 }
 0x234   :  { %2960 = vtanh.bf16 %v1185_v16  ;;  %v1040_v20 = vpop.f32.mrb[53].mxu1 }
 0x235   :  { %2962 = vtanh.bf16 %v1184_v17  ;;  %v2634_v22 = vpop.f32.mrb[54].mxu1  ;;  %2699 = vmatprep.mubr.bf16.mxu0 %v1276_v19  ;;  %v1673_v19 = vld [vmem:[%s3622_s6] sm:$0x1] }
 0x236   :  { %v1114_v23 = vpack.c.bf16 %v2634_v22, %v2633_v18  ;;  %v1043_v24 = vpop.f32.mrb[55].mxu1  ;;  %2700 = vmatmul.mubr.bf16.gmra.mrb[104].mxu0 %v1277_v21 }
 0x237   :  { %v2957_v25 = vpop.eup %2956  ;;  %v1113_v26 = vpack.c.bf16 %v1043_v24, %v1040_v20  ;;  %v1674_v20 = vpack.c.bf16 %v1673_v19, %v1673_v19 }
 0x238   :  { %v2959_v27 = vpop.eup %2958  ;;  %v1155_v28 = vadd.bf16 %v3439_v5, %v1114_v23  ;;  %v1247_v29 = vmul.bf16 1056980736, %v2957_v25 }
 0x239   :  { %v1154_v30 = vadd.bf16 %v3439_v5, %v1113_v26  ;;  %v1246_v31 = vmul.bf16 1056980736, %v2959_v27  ;;  %v1676_v21 = vpack.i.b16 %v1674_v20, %v1674_v20 }
 0x23a   :  { %v1187_v32 = vmul.bf16 1056980736, %v1155_v28  ;;  %v1279_v37 = vadd.bf16 1056980736, %v1247_v29 }
 0x23b   :  { %v1186_v33 = vmul.bf16 1056980736, %v1154_v30  ;;  %v2637_v34 = vpop.f32.mrb[56].mxu1  ;;  %v1278_v35 = vadd.bf16 1056980736, %v1246_v31  ;;  %v3501_v24 = vrot.slane %v1676_v21, %v3374_v47 }
 0x23c   :  { %2964 = vtanh.bf16 %v1187_v32  ;;  %v1056_v36 = vpop.f32.mrb[57].mxu1 }
 0x23d   :  { %2966 = vtanh.bf16 %v1186_v33  ;;  %v2638_v38 = vpop.f32.mrb[58].mxu1  ;;  %2703 = vmatprep.mubr.bf16.mxu0 %v1278_v35 }
 0x23e   :  { %v1116_v39 = vpack.c.bf16 %v2638_v38, %v2637_v34  ;;  %v1059_v40 = vpop.f32.mrb[59].mxu1  ;;  %2704 = vmatmul.mubr.bf16.gmra.mrb[108].mxu0 %v1279_v37 }
 0x23f   :  { %v2961_v41 = vpop.eup %2960  ;;  %v1115_v42 = vpack.c.bf16 %v1059_v40, %v1056_v36 }
 0x240   :  { %v2963_v43 = vpop.eup %2962  ;;  %v1157_v44 = vadd.bf16 %v3439_v5, %v1116_v39  ;;  %v1249_v45 = vmul.bf16 1056980736, %v2961_v41 }
 0x241   :  { %v1156_v46 = vadd.bf16 %v3439_v5, %v1115_v42  ;;  %v1248_v48 = vmul.bf16 1056980736, %v2963_v43 }
 0x242   :  { %v1189_v49 = vmul.bf16 1056980736, %v1157_v44  ;;  %v1281_v55 = vadd.bf16 1056980736, %v1249_v45 }
 0x243   :  { %v1188_v51 = vmul.bf16 1056980736, %v1156_v46  ;;  %v2641_v52 = vpop.f32.mrb[60].mxu1  ;;  %v1280_v53 = vadd.bf16 1056980736, %v1248_v48 }
 0x244   :  { %2968 = vtanh.bf16 %v1189_v49  ;;  %v1072_v54 = vpop.f32.mrb[61].mxu1 }
 0x245   :  { %2970 = vtanh.bf16 %v1188_v51  ;;  %v2642_v56 = vpop.f32.mrb[62].mxu1  ;;  %2707 = vmatprep.mubr.bf16.mxu0 %v1280_v53 }
 0x246   :  { %v1118_v50 = vpack.c.bf16 %v2642_v56, %v2641_v52  ;;  %v1075_v57 = vpop.f32.mrb[63].mxu1  ;;  %2708 = vmatmul.mubr.bf16.gmra.mrb[112].mxu0 %v1281_v55 }
 0x247   :  { %v2965_v58 = vpop.eup %2964  ;;  %v1117_v59 = vpack.c.bf16 %v1075_v57, %v1072_v54 }
 0x248   :  { %v2967_v60 = vpop.eup %2966  ;;  %v1159_v61 = vadd.bf16 %v3439_v5, %v1118_v50  ;;  %v1251_v62 = vmul.bf16 1056980736, %v2965_v58 }
 0x249   :  { %v1158_v63 = vadd.bf16 %v3439_v5, %v1117_v59  ;;  %v1250_v0 = vmul.bf16 1056980736, %v2967_v60  ;;  %v2847_v5 = vld [vmem:[%s3623_s7 + $0x38] sm:$0xff]  }
 0x24a   :  { %v1191_v1 = vmul.bf16 1056980736, %v1159_v61  ;;  %v1283_v6 = vadd.bf16 1056980736, %v1251_v62  ;;  %2810 = vmatprep.subr.bf16.mxu1 %v2847_v5  ;;  %2737 = vmatprep.subr.bf16.mxu0 %v2847_v5 }
 0x24b   :  { %v1190_v3 = vmul.bf16 1056980736, %v1158_v63  ;;  %v1282_v4 = vadd.bf16 1056980736, %v1250_v0  ;;  %2818 = vmatpush3.bf16.msra.mxu1 %v2847_v5  ;;  %2738 = vmatpush3.bf16.msra.mxu0 %v2847_v5 }
 0x24c   :  { %2972 = vtanh.bf16 %v1191_v1 }
 0x24d   :  { %2974 = vtanh.bf16 %v1190_v3  ;;  %2711 = vmatprep.mubr.bf16.mxu0 %v1282_v4 }
 0x24e   :  { %2712 = vmatmul.mubr.bf16.gmra.mrb[116].mxu0 %v1283_v6 }
 0x24f   :  { %v2969_v7 = vpop.eup %2968 }
 0x250   :  { %v2971_v8 = vpop.eup %2970  ;;  %v1253_v9 = vmul.bf16 1056980736, %v2969_v7 }
 0x251   :  { %v1252_v10 = vmul.bf16 1056980736, %v2971_v8 }
 0x252   :  { %v1285_v12 = vadd.bf16 1056980736, %v1253_v9 }
 0x253   :  { %v1284_v11 = vadd.bf16 1056980736, %v1252_v10 }
 0x255   :  { %2715 = vmatprep.mubr.bf16.mxu0 %v1284_v11 }
 0x256   :  { %2716 = vmatmul.mubr.bf16.gmra.mrb[120].mxu0 %v1285_v12 }
 0x257   :  { %v2973_v13 = vpop.eup %2972 }
 0x258   :  { %v2975_v14 = vpop.eup %2974  ;;  %v1255_v15 = vmul.bf16 1056980736, %v2973_v13 }
 0x259   :  { %v1254_v16 = vmul.bf16 1056980736, %v2975_v14 }
 0x25a   :  { %v1287_v18 = vadd.bf16 1056980736, %v1255_v15 }
 0x25b   :  { %v1286_v17 = vadd.bf16 1056980736, %v1254_v16 }
 0x25d   :  { %2719 = vmatprep.mubr.bf16.mxu0 %v1286_v17 }
 0x25e   :  { %2720 = vmatmul.mubr.bf16.gmra.mrb[124].mxu0 %v1287_v18 }
 0x2b9   :  { %v2661_v22 = vpop.f32.mrb[64].mxu0 }
 0x2ba   :  { %v1386_v23 = vpop.f32.mrb[65].mxu0 }
 0x2bb   :  { %v2662_v25 = vpop.f32.mrb[66].mxu0 }
 0x2bc   :  { %v1642_v26 = vpack.c.bf16 %v2662_v25, %v2661_v22  ;;  %v1389_v27 = vpop.f32.mrb[67].mxu0 }
 0x2bd   :  { %v1641_v28 = vpack.c.bf16 %v1389_v27, %v1386_v23 }
 0x2be   :  { %v1683_v29 = vadd.bf16 %v3501_v24, %v1642_v26 }
 0x2bf   :  { %v1682_v30 = vadd.bf16 %v3501_v24, %v1641_v28 }
 0x2c0   :  { %v1715_v31 = vmul.bf16 1056980736, %v1683_v29 }
 0x2c1   :  { %v1714_v32 = vmul.bf16 1056980736, %v1682_v30  ;;  %v2665_v33 = vpop.f32.mrb[68].mxu0 }
 0x2c2   :  { %2976 = vtanh.bf16 %v1715_v31  ;;  %v1402_v34 = vpop.f32.mrb[69].mxu0 }
 0x2c3   :  { %2978 = vtanh.bf16 %v1714_v32  ;;  %v2666_v35 = vpop.f32.mrb[70].mxu0 }
 0x2c4   :  { %v1644_v36 = vpack.c.bf16 %v2666_v35, %v2665_v33  ;;  %v1405_v37 = vpop.f32.mrb[71].mxu0 }
 0x2c5   :  { %v1643_v38 = vpack.c.bf16 %v1405_v37, %v1402_v34 }
 0x2c6   :  { %v1685_v47 = vadd.bf16 %v3501_v24, %v1644_v36 }
 0x2c7   :  { %v1684_v39 = vadd.bf16 %v3501_v24, %v1643_v38 }
 0x2c8   :  { %v1717_v40 = vmul.bf16 1056980736, %v1685_v47 }
 0x2c9   :  { %v1716_v41 = vmul.bf16 1056980736, %v1684_v39  ;;  %v2669_v42 = vpop.f32.mrb[72].mxu0 }
 0x2ca   :  { %2980 = vtanh.bf16 %v1717_v40  ;;  %v1418_v43 = vpop.f32.mrb[73].mxu0 }
 0x2cb   :  { %2982 = vtanh.bf16 %v1716_v41  ;;  %v2670_v44 = vpop.f32.mrb[74].mxu0 }
 0x2cc   :  { %v1646_v45 = vpack.c.bf16 %v2670_v44, %v2669_v42  ;;  %v1421_v46 = vpop.f32.mrb[75].mxu0 }
 0x2cd   :  { %v2977_v48 = vpop.eup %2976  ;;  %v1645_v49 = vpack.c.bf16 %v1421_v46, %v1418_v43 }
 0x2ce   :  { %v2979_v51 = vpop.eup %2978  ;;  %v1779_v52 = vmul.bf16 1056980736, %v2977_v48  ;;  %v1687_v53 = vadd.bf16 %v3501_v24, %v1646_v45 }
 0x2cf   :  { %v1686_v54 = vadd.bf16 %v3501_v24, %v1645_v49  ;;  %v1778_v55 = vmul.bf16 1056980736, %v2979_v51 }
 0x2d0   :  { %v1719_v56 = vmul.bf16 1056980736, %v1687_v53  ;;  %v1811_v59 = vadd.bf16 1056980736, %v1779_v52 }
 0x2d1   :  { %v1718_v50 = vmul.bf16 1056980736, %v1686_v54  ;;  %v2673_v57 = vpop.f32.mrb[76].mxu0  ;;  %v1810_v58 = vadd.bf16 1056980736, %v1778_v55 }
 0x2d2   :  { %2984 = vtanh.bf16 %v1719_v56  ;;  %v1434_v60 = vpop.f32.mrb[77].mxu0 }
 0x2d3   :  { %2986 = vtanh.bf16 %v1718_v50  ;;  %v2674_v61 = vpop.f32.mrb[78].mxu0  ;;  %2739 = vmatprep.mubr.bf16.mxu0 %v1810_v58 }
 0x2d4   :  { %v1648_v62 = vpack.c.bf16 %v2674_v61, %v2673_v57  ;;  %v1437_v63 = vpop.f32.mrb[79].mxu0  ;;  %2740 = vmatmul.mubr.bf16.vlgmr.msra.gmra.mrb[128].mxu0 %v1811_v59 }
 0x2d5   :  { %v2981_v0 = vpop.eup %2980  ;;  %v1647_v1 = vpack.c.bf16 %v1437_v63, %v1434_v60 }
 0x2d6   :  { %v2983_v2 = vpop.eup %2982  ;;  %v1781_v3 = vmul.bf16 1056980736, %v2981_v0  ;;  %v1689_v4 = vadd.bf16 %v3501_v24, %v1648_v62 }
 0x2d7   :  { %v1688_v6 = vadd.bf16 %v3501_v24, %v1647_v1  ;;  %v1780_v5 = vmul.bf16 1056980736, %v2983_v2 }
 0x2d8   :  { %v1721_v7 = vmul.bf16 1056980736, %v1689_v4  ;;  %v1813_v11 = vadd.bf16 1056980736, %v1781_v3 }
 0x2d9   :  { %v1720_v8 = vmul.bf16 1056980736, %v1688_v6  ;;  %v2677_v9 = vpop.f32.mrb[80].mxu0  ;;  %v1812_v10 = vadd.bf16 1056980736, %v1780_v5 }
 0x2da   :  { %2988 = vtanh.bf16 %v1721_v7  ;;  %v1450_v12 = vpop.f32.mrb[81].mxu0 }
 0x2db   :  { %2990 = vtanh.bf16 %v1720_v8  ;;  %v2678_v13 = vpop.f32.mrb[82].mxu0  ;;  %2743 = vmatprep.mubr.bf16.mxu1 %v1812_v10 }
 0x2dc   :  { %v1650_v14 = vpack.c.bf16 %v2678_v13, %v2677_v9  ;;  %v1453_v15 = vpop.f32.mrb[83].mxu0  ;;  %2744 = vmatmul.mubr.bf16.vlgmr.msra.gmra.mrb[64].mxu1 %v1813_v11 }
 0x2dd   :  { %v2985_v16 = vpop.eup %2984  ;;  %v1649_v17 = vpack.c.bf16 %v1453_v15, %v1450_v12 }
 0x2de   :  { %v2987_v18 = vpop.eup %2986  ;;  %v1691_v19 = vadd.bf16 %v3501_v24, %v1650_v14  ;;  %v1783_v20 = vmul.bf16 1056980736, %v2985_v16 }
 0x2df   :  { %v1690_v21 = vadd.bf16 %v3501_v24, %v1649_v17  ;;  %v1782_v22 = vmul.bf16 1056980736, %v2987_v18 }
 0x2e0   :  { %v1723_v23 = vmul.bf16 1056980736, %v1691_v19  ;;  %v1815_v29 = vadd.bf16 1056980736, %v1783_v20 }
 0x2e1   :  { %v1722_v25 = vmul.bf16 1056980736, %v1690_v21  ;;  %v2681_v26 = vpop.f32.mrb[84].mxu0  ;;  %v1814_v27 = vadd.bf16 1056980736, %v1782_v22 }
 0x2e2   :  { %2992 = vtanh.bf16 %v1723_v23  ;;  %v1466_v28 = vpop.f32.mrb[85].mxu0 }
 0x2e3   :  { %2994 = vtanh.bf16 %v1722_v25  ;;  %v2682_v30 = vpop.f32.mrb[86].mxu0  ;;  %2747 = vmatprep.mubr.bf16.mxu1 %v1814_v27 }
 0x2e4   :  { %v1652_v31 = vpack.c.bf16 %v2682_v30, %v2681_v26  ;;  %v1469_v32 = vpop.f32.mrb[87].mxu0  ;;  %2748 = vmatmul.mubr.bf16.gmra.mrb[68].mxu1 %v1815_v29 }
 0x2e5   :  { %v2989_v33 = vpop.eup %2988  ;;  %v1651_v34 = vpack.c.bf16 %v1469_v32, %v1466_v28 }
 0x2e6   :  { %v2991_v35 = vpop.eup %2990  ;;  %v1693_v36 = vadd.bf16 %v3501_v24, %v1652_v31  ;;  %v1785_v37 = vmul.bf16 1056980736, %v2989_v33 }
 0x2e7   :  { %v1692_v38 = vadd.bf16 %v3501_v24, %v1651_v34  ;;  %v1784_v47 = vmul.bf16 1056980736, %v2991_v35 }
 0x2e8   :  { %v1725_v39 = vmul.bf16 1056980736, %v1693_v36  ;;  %v1817_v44 = vadd.bf16 1056980736, %v1785_v37 }
 0x2e9   :  { %v1724_v40 = vmul.bf16 1056980736, %v1692_v38  ;;  %v2685_v41 = vpop.f32.mrb[88].mxu0  ;;  %v1816_v42 = vadd.bf16 1056980736, %v1784_v47 }
 0x2ea   :  { %2996 = vtanh.bf16 %v1725_v39  ;;  %v1482_v43 = vpop.f32.mrb[89].mxu0 }
 0x2eb   :  { %2998 = vtanh.bf16 %v1724_v40  ;;  %v2686_v45 = vpop.f32.mrb[90].mxu0  ;;  %2751 = vmatprep.mubr.bf16.mxu1 %v1816_v42 }
 0x2ec   :  { %v1654_v46 = vpack.c.bf16 %v2686_v45, %v2685_v41  ;;  %v1485_v48 = vpop.f32.mrb[91].mxu0  ;;  %2752 = vmatmul.mubr.bf16.gmra.mrb[72].mxu1 %v1817_v44 }
 0x2ed   :  { %v2993_v49 = vpop.eup %2992  ;;  %v1653_v51 = vpack.c.bf16 %v1485_v48, %v1482_v43 }
 0x2ee   :  { %v2995_v52 = vpop.eup %2994  ;;  %v1695_v53 = vadd.bf16 %v3501_v24, %v1654_v46  ;;  %v1787_v54 = vmul.bf16 1056980736, %v2993_v49 }
 0x2ef   :  { %v1694_v55 = vadd.bf16 %v3501_v24, %v1653_v51  ;;  %v1786_v56 = vmul.bf16 1056980736, %v2995_v52 }
 0x2f0   :  { %v1727_v50 = vmul.bf16 1056980736, %v1695_v53  ;;  %v1819_v61 = vadd.bf16 1056980736, %v1787_v54 }
 0x2f1   :  { %v1726_v57 = vmul.bf16 1056980736, %v1694_v55  ;;  %v2689_v58 = vpop.f32.mrb[92].mxu0  ;;  %v1818_v59 = vadd.bf16 1056980736, %v1786_v56 }
 0x2f2   :  { %3000 = vtanh.bf16 %v1727_v50  ;;  %v1498_v60 = vpop.f32.mrb[93].mxu0 }
 0x2f3   :  { %3002 = vtanh.bf16 %v1726_v57  ;;  %v2690_v62 = vpop.f32.mrb[94].mxu0  ;;  %2755 = vmatprep.mubr.bf16.mxu1 %v1818_v59 }
 0x2f4   :  { %v1656_v63 = vpack.c.bf16 %v2690_v62, %v2689_v58  ;;  %v1501_v0 = vpop.f32.mrb[95].mxu0  ;;  %2756 = vmatmul.mubr.bf16.gmra.mrb[76].mxu1 %v1819_v61 }
 0x2f5   :  { %v2997_v1 = vpop.eup %2996  ;;  %v1655_v2 = vpack.c.bf16 %v1501_v0, %v1498_v60 }
 0x2f6   :  { %v2999_v3 = vpop.eup %2998  ;;  %v1697_v4 = vadd.bf16 %v3501_v24, %v1656_v63  ;;  %v1789_v6 = vmul.bf16 1056980736, %v2997_v1 }
 0x2f7   :  { %v1696_v5 = vadd.bf16 %v3501_v24, %v1655_v2  ;;  %v1788_v7 = vmul.bf16 1056980736, %v2999_v3 }
 0x2f8   :  { %v1729_v8 = vmul.bf16 1056980736, %v1697_v4  ;;  %v1821_v13 = vadd.bf16 1056980736, %v1789_v6 }
 0x2f9   :  { %v1728_v9 = vmul.bf16 1056980736, %v1696_v5  ;;  %v2693_v10 = vpop.f32.mrb[96].mxu0  ;;  %v1820_v11 = vadd.bf16 1056980736, %v1788_v7 }
 0x2fa   :  { %3004 = vtanh.bf16 %v1729_v8  ;;  %v1514_v12 = vpop.f32.mrb[97].mxu0 }
 0x2fb   :  { %3006 = vtanh.bf16 %v1728_v9  ;;  %v2694_v14 = vpop.f32.mrb[98].mxu0  ;;  %2759 = vmatprep.mubr.bf16.mxu1 %v1820_v11 }
 0x2fc   :  { %v1658_v15 = vpack.c.bf16 %v2694_v14, %v2693_v10  ;;  %v1517_v16 = vpop.f32.mrb[99].mxu0  ;;  %2760 = vmatmul.mubr.bf16.gmra.mrb[80].mxu1 %v1821_v13 }
 0x2fd   :  { %v3001_v17 = vpop.eup %3000  ;;  %v1657_v18 = vpack.c.bf16 %v1517_v16, %v1514_v12 }
 0x2fe   :  { %v3003_v19 = vpop.eup %3002  ;;  %v1699_v20 = vadd.bf16 %v3501_v24, %v1658_v15  ;;  %v1791_v21 = vmul.bf16 1056980736, %v3001_v17 }
 0x2ff   :  { %v1698_v22 = vadd.bf16 %v3501_v24, %v1657_v18  ;;  %v1790_v23 = vmul.bf16 1056980736, %v3003_v19 }
 0x300   :  { %v1731_v25 = vmul.bf16 1056980736, %v1699_v20  ;;  %v1823_v30 = vadd.bf16 1056980736, %v1791_v21 }
 0x301   :  { %v1730_v26 = vmul.bf16 1056980736, %v1698_v22  ;;  %v2697_v27 = vpop.f32.mrb[100].mxu0  ;;  %v1822_v28 = vadd.bf16 1056980736, %v1790_v23 }
 0x302   :  { %3008 = vtanh.bf16 %v1731_v25  ;;  %v1530_v29 = vpop.f32.mrb[101].mxu0 }
 0x303   :  { %3010 = vtanh.bf16 %v1730_v26  ;;  %v2698_v31 = vpop.f32.mrb[102].mxu0  ;;  %2763 = vmatprep.mubr.bf16.mxu1 %v1822_v28 }
 0x304   :  { %v1660_v32 = vpack.c.bf16 %v2698_v31, %v2697_v27  ;;  %v1533_v33 = vpop.f32.mrb[103].mxu0  ;;  %2764 = vmatmul.mubr.bf16.gmra.mrb[84].mxu1 %v1823_v30 }
 0x305   :  { %v3005_v34 = vpop.eup %3004  ;;  %v1659_v35 = vpack.c.bf16 %v1533_v33, %v1530_v29 }
 0x306   :  { %v3007_v36 = vpop.eup %3006  ;;  %v1701_v37 = vadd.bf16 %v3501_v24, %v1660_v32  ;;  %v1793_v38 = vmul.bf16 1056980736, %v3005_v34 }
 0x307   :  { %v1700_v47 = vadd.bf16 %v3501_v24, %v1659_v35  ;;  %v1792_v39 = vmul.bf16 1056980736, %v3007_v36 }
 0x308   :  { %v1733_v40 = vmul.bf16 1056980736, %v1701_v37  ;;  %v1825_v45 = vadd.bf16 1056980736, %v1793_v38 }
 0x309   :  { %v1732_v41 = vmul.bf16 1056980736, %v1700_v47  ;;  %v2701_v42 = vpop.f32.mrb[104].mxu0  ;;  %v1824_v43 = vadd.bf16 1056980736, %v1792_v39 }
 0x30a   :  { %3012 = vtanh.bf16 %v1733_v40  ;;  %v1546_v44 = vpop.f32.mrb[105].mxu0 }
 0x30b   :  { %3014 = vtanh.bf16 %v1732_v41  ;;  %v2702_v46 = vpop.f32.mrb[106].mxu0  ;;  %2767 = vmatprep.mubr.bf16.mxu1 %v1824_v43 }
 0x30c   :  { %v1662_v48 = vpack.c.bf16 %v2702_v46, %v2701_v42  ;;  %v1549_v49 = vpop.f32.mrb[107].mxu0  ;;  %2768 = vmatmul.mubr.bf16.gmra.mrb[88].mxu1 %v1825_v45 }
 0x30d   :  { %v3009_v51 = vpop.eup %3008  ;;  %v1661_v52 = vpack.c.bf16 %v1549_v49, %v1546_v44 }
 0x30e   :  { %v3011_v53 = vpop.eup %3010  ;;  %v1703_v54 = vadd.bf16 %v3501_v24, %v1662_v48  ;;  %v1795_v55 = vmul.bf16 1056980736, %v3009_v51 }
 0x30f   :  { %v1702_v56 = vadd.bf16 %v3501_v24, %v1661_v52  ;;  %v1794_v50 = vmul.bf16 1056980736, %v3011_v53 }
 0x310   :  { %v1735_v57 = vmul.bf16 1056980736, %v1703_v54  ;;  %v1827_v62 = vadd.bf16 1056980736, %v1795_v55 }
 0x311   :  { %v1734_v58 = vmul.bf16 1056980736, %v1702_v56  ;;  %v2705_v59 = vpop.f32.mrb[108].mxu0  ;;  %v1826_v60 = vadd.bf16 1056980736, %v1794_v50 }
 0x312   :  { %3016 = vtanh.bf16 %v1735_v57  ;;  %v1562_v61 = vpop.f32.mrb[109].mxu0 }
 0x313   :  { %3018 = vtanh.bf16 %v1734_v58  ;;  %v2706_v63 = vpop.f32.mrb[110].mxu0  ;;  %2771 = vmatprep.mubr.bf16.mxu1 %v1826_v60 }
 0x314   :  { %v1664_v0 = vpack.c.bf16 %v2706_v63, %v2705_v59  ;;  %v1565_v1 = vpop.f32.mrb[111].mxu0  ;;  %2772 = vmatmul.mubr.bf16.gmra.mrb[92].mxu1 %v1827_v62 }
 0x315   :  { %v3013_v2 = vpop.eup %3012  ;;  %v1663_v3 = vpack.c.bf16 %v1565_v1, %v1562_v61 }
 0x316   :  { %v3015_v4 = vpop.eup %3014  ;;  %v1705_v6 = vadd.bf16 %v3501_v24, %v1664_v0  ;;  %v1797_v5 = vmul.bf16 1056980736, %v3013_v2 }
 0x317   :  { %v1704_v7 = vadd.bf16 %v3501_v24, %v1663_v3  ;;  %v1796_v8 = vmul.bf16 1056980736, %v3015_v4 }
 0x318   :  { %v1737_v9 = vmul.bf16 1056980736, %v1705_v6  ;;  %v1829_v14 = vadd.bf16 1056980736, %v1797_v5 }
 0x319   :  { %v1736_v10 = vmul.bf16 1056980736, %v1704_v7  ;;  %v2709_v11 = vpop.f32.mrb[112].mxu0  ;;  %v1828_v12 = vadd.bf16 1056980736, %v1796_v8 }
 0x31a   :  { %3020 = vtanh.bf16 %v1737_v9  ;;  %v1578_v13 = vpop.f32.mrb[113].mxu0 }
 0x31b   :  { %3022 = vtanh.bf16 %v1736_v10  ;;  %v2710_v15 = vpop.f32.mrb[114].mxu0  ;;  %2775 = vmatprep.mubr.bf16.mxu1 %v1828_v12 }
 0x31c   :  { %v1666_v16 = vpack.c.bf16 %v2710_v15, %v2709_v11  ;;  %v1581_v17 = vpop.f32.mrb[115].mxu0  ;;  %2776 = vmatmul.mubr.bf16.gmra.mrb[96].mxu1 %v1829_v14 }
 0x31d   :  { %v3017_v18 = vpop.eup %3016  ;;  %v1665_v19 = vpack.c.bf16 %v1581_v17, %v1578_v13 }
 0x31e   :  { %v3019_v20 = vpop.eup %3018  ;;  %v1707_v21 = vadd.bf16 %v3501_v24, %v1666_v16  ;;  %v1799_v22 = vmul.bf16 1056980736, %v3017_v18 }
 0x31f   :  { %v1706_v23 = vadd.bf16 %v3501_v24, %v1665_v19  ;;  %v1798_v25 = vmul.bf16 1056980736, %v3019_v20 }
 0x320   :  { %v1739_v26 = vmul.bf16 1056980736, %v1707_v21  ;;  %v1831_v31 = vadd.bf16 1056980736, %v1799_v22 }
 0x321   :  { %v1738_v27 = vmul.bf16 1056980736, %v1706_v23  ;;  %v2713_v28 = vpop.f32.mrb[116].mxu0  ;;  %v1830_v29 = vadd.bf16 1056980736, %v1798_v25 }
 0x322   :  { %3024 = vtanh.bf16 %v1739_v26  ;;  %v1594_v30 = vpop.f32.mrb[117].mxu0  ;;  %v3538_v26 = vld [vmem:[%s3624_s8] ss:$0 sm:$0xff]  ;;  %s3064_s8 = smov [#allocation2]  }
 0x323   :  { %3026 = vtanh.bf16 %v1738_v27  ;;  %v2714_v32 = vpop.f32.mrb[118].mxu0  ;;  %2779 = vmatprep.mubr.bf16.mxu1 %v1830_v29  ;;  %s2271_s11 = sshll.u32 %s3064_s8, 4  ;;  %s2272_s11 = int_to_ptr.vmem [resolvable:$true] %s2271_s11 }
 0x324   :  { %v1668_v33 = vpack.c.bf16 %v2714_v32, %v2713_v28  ;;  %v1597_v34 = vpop.f32.mrb[119].mxu0  ;;  %2780 = vmatmul.mubr.bf16.gmra.mrb[100].mxu1 %v1831_v31  ;;  %s3040_s12 = scalar_lea.vmem %s2272_s11, 8192  ;;  %p3045_p1 = scmp.lt.s32.totalorder %s2272_s11, %s2272_s11 }
 0x325   :  { %v3021_v35 = vpop.eup %3020  ;;  %v1667_v36 = vpack.c.bf16 %v1597_v34, %v1594_v30  ;;  %p3041_p0 = scmp.ne.s32.totalorder %s2272_s11, %s3040_s12  ;;  %p3046_p2 = scmp.lt.s32.totalorder %s3040_s12, %s3040_s12 }
 0x326   :  { %v3023_v37 = vpop.eup %3022  ;;  %v1709_v38 = vadd.bf16 %v3501_v24, %v1668_v33  ;;  %v1801_v47 = vmul.bf16 1056980736, %v3021_v35 }
 0x327   :  { %v1708_v39 = vadd.bf16 %v3501_v24, %v1667_v36  ;;  %v1800_v40 = vmul.bf16 1056980736, %v3023_v37  ;;  %p3047_p3 = por %p3046_p2, %p3045_p1 }
 0x328   :  { %v1741_v41 = vmul.bf16 1056980736, %v1709_v38  ;;  %v1833_v46 = vadd.bf16 1056980736, %v1801_v47 }
 0x329   :  { %v1740_v42 = vmul.bf16 1056980736, %v1708_v39  ;;  %v2717_v43 = vpop.f32.mrb[120].mxu0  ;;  %v1832_v44 = vadd.bf16 1056980736, %v1800_v40  ;;  %p3048_p4 = pnand %p3047_p3, %p3041_p0 }
 0x32a   :  { %3028 = vtanh.bf16 %v1741_v41  ;;  %v1610_v45 = vpop.f32.mrb[121].mxu0 }
 0x32b   :  { %3030 = vtanh.bf16 %v1740_v42  ;;  %v2718_v48 = vpop.f32.mrb[122].mxu0  ;;  %2783 = vmatprep.mubr.bf16.mxu1 %v1832_v44 }
 0x32c   :  { %v1670_v49 = vpack.c.bf16 %v2718_v48, %v2717_v43  ;;  %v1613_v51 = vpop.f32.mrb[123].mxu0  ;;  %2784 = vmatmul.mubr.bf16.gmra.mrb[104].mxu1 %v1833_v46 }
 0x32d   :  { %v3025_v52 = vpop.eup %3024  ;;  %v1669_v53 = vpack.c.bf16 %v1613_v51, %v1610_v45 }
 0x32e   :  { %v3027_v54 = vpop.eup %3026  ;;  %v1711_v55 = vadd.bf16 %v3501_v24, %v1670_v49  ;;  %v1803_v56 = vmul.bf16 1056980736, %v3025_v52 }
 0x32f   :  { %v1710_v50 = vadd.bf16 %v3501_v24, %v1669_v53  ;;  %v1802_v57 = vmul.bf16 1056980736, %v3027_v54 }
 0x330   :  { %v1743_v58 = vmul.bf16 1056980736, %v1711_v55  ;;  %v1835_v63 = vadd.bf16 1056980736, %v1803_v56 }
 0x331   :  { %v1742_v59 = vmul.bf16 1056980736, %v1710_v50  ;;  %v2721_v60 = vpop.f32.mrb[124].mxu0  ;;  %v1834_v61 = vadd.bf16 1056980736, %v1802_v57 }
 0x332   :  { %3032 = vtanh.bf16 %v1743_v58  ;;  %v1626_v62 = vpop.f32.mrb[125].mxu0 }
 0x333   :  { %3034 = vtanh.bf16 %v1742_v59  ;;  %v2722_v0 = vpop.f32.mrb[126].mxu0  ;;  %2787 = vmatprep.mubr.bf16.mxu1 %v1834_v61 }
 0x334   :  { %v1672_v1 = vpack.c.bf16 %v2722_v0, %v2721_v60  ;;  %v1629_v2 = vpop.f32.mrb[127].mxu0  ;;  %2788 = vmatmul.mubr.bf16.gmra.mrb[108].mxu1 %v1835_v63 }
 0x335   :  { %v3029_v3 = vpop.eup %3028  ;;  %v1671_v4 = vpack.c.bf16 %v1629_v2, %v1626_v62 }
 0x336   :  { %v3031_v6 = vpop.eup %3030  ;;  %v1713_v5 = vadd.bf16 %v3501_v24, %v1672_v1  ;;  %v1805_v7 = vmul.bf16 1056980736, %v3029_v3 }
 0x337   :  { %v1712_v8 = vadd.bf16 %v3501_v24, %v1671_v4  ;;  %v1804_v9 = vmul.bf16 1056980736, %v3031_v6 }
 0x338   :  { %v1745_v10 = vmul.bf16 1056980736, %v1713_v5  ;;  %v1837_v13 = vadd.bf16 1056980736, %v1805_v7 }
 0x339   :  { %v1744_v11 = vmul.bf16 1056980736, %v1712_v8  ;;  %v1836_v12 = vadd.bf16 1056980736, %v1804_v9 }
 0x33a   :  { %3036 = vtanh.bf16 %v1745_v10 }
 0x33b   :  { %3038 = vtanh.bf16 %v1744_v11  ;;  %2791 = vmatprep.mubr.bf16.mxu1 %v1836_v12 }
 0x33c   :  { %2792 = vmatmul.mubr.bf16.gmra.mrb[112].mxu1 %v1837_v13 }
 0x33d   :  { %v3033_v14 = vpop.eup %3032 }
 0x33e   :  { %v3035_v15 = vpop.eup %3034  ;;  %v1807_v16 = vmul.bf16 1056980736, %v3033_v14 }
 0x33f   :  { %v1806_v17 = vmul.bf16 1056980736, %v3035_v15 }
 0x340   :  { %v1839_v19 = vadd.bf16 1056980736, %v1807_v16 }
 0x341   :  { %v1838_v18 = vadd.bf16 1056980736, %v1806_v17 }
 0x343   :  { %2795 = vmatprep.mubr.bf16.mxu1 %v1838_v18 }
 0x344   :  { %2796 = vmatmul.mubr.bf16.gmra.mrb[116].mxu1 %v1839_v19 }
 0x345   :  { %v3037_v20 = vpop.eup %3036 }
 0x346   :  { %v3039_v21 = vpop.eup %3038  ;;  %v1809_v24 = vmul.bf16 1056980736, %v3037_v20 }
 0x347   :  { %v1808_v22 = vmul.bf16 1056980736, %v3039_v21 }
 0x348   :  { %v1841_v25 = vadd.bf16 1056980736, %v1809_v24 }
 0x349   :  { %v1840_v23 = vadd.bf16 1056980736, %v1808_v22 }
 0x34b   :  { %2799 = vmatprep.mubr.bf16.mxu1 %v1840_v23 }
 0x34c   :  { %2800 = vmatmul.mubr.bf16.gmra.mrb[120].mxu1 %v1841_v25 }
 0x3a7   :  { %v2741_v27 = vpop.f32.mrb[128].mxu0 }
 0x3a8   :  { %v1956_v28 = vadd.f32 %v2741_v27, %v3538_v26  ;;  %v1947_v29 = vpop.f32.mrb[129].mxu0 }
 0x3a9   :  { %v1948_v30 = vadd.f32 %v3538_v26, %v1947_v29  ;;  %v2742_v31 = vpop.f32.mrb[130].mxu0 }
 0x3aa   :  { %2204 = vst [vmem:[#allocation2 + $0x10] sm:$0xff] %v1956_v28  ;;  %v1959_v32 = vadd.f32 %v2742_v31, %v3538_v26  ;;  %v1950_v33 = vpop.f32.mrb[131].mxu0 }
 0x3ab   :  { %2202 = vst [vmem:[#allocation2] sm:$0xff] %v1948_v30  ;;  %v1951_v34 = vadd.f32 %v3538_v26, %v1950_v33 }
 0x3ac   :  { %2205 = vst [vmem:[#allocation2 + $0x18] sm:$0xff] %v1959_v32 }
 0x3ad   :  { %2203 = vst [vmem:[#allocation2 + $0x8] sm:$0xff] %v1951_v34 }
 0x3af   :  { %v2745_v35 = vpop.f32.mrb[64].mxu1 }
 0x3b0   :  { %v1972_v36 = vadd.f32 %v2745_v35, %v3538_v26  ;;  %v1963_v37 = vpop.f32.mrb[65].mxu1 }
 0x3b1   :  { %v1964_v38 = vadd.f32 %v3538_v26, %v1963_v37  ;;  %v2746_v47 = vpop.f32.mrb[66].mxu1 }
 0x3b2   :  { %2208 = vst [vmem:[#allocation2 + $0x30] sm:$0xff] %v1972_v36  ;;  %v1975_v39 = vadd.f32 %v2746_v47, %v3538_v26  ;;  %v1966_v40 = vpop.f32.mrb[67].mxu1 }
 0x3b3   :  { %2206 = vst [vmem:[#allocation2 + $0x20] sm:$0xff] %v1964_v38  ;;  %v1967_v41 = vadd.f32 %v3538_v26, %v1966_v40 }
 0x3b4   :  { %2209 = vst [vmem:[#allocation2 + $0x38] sm:$0xff] %v1975_v39 }
 0x3b5   :  { %2207 = vst [vmem:[#allocation2 + $0x28] sm:$0xff] %v1967_v41 }
 0x3b7   :  { %v2749_v42 = vpop.f32.mrb[68].mxu1 }
 0x3b8   :  { %v1988_v43 = vadd.f32 %v2749_v42, %v3538_v26  ;;  %v1979_v44 = vpop.f32.mrb[69].mxu1 }
 0x3b9   :  { %v1980_v45 = vadd.f32 %v3538_v26, %v1979_v44  ;;  %v2750_v46 = vpop.f32.mrb[70].mxu1 }
 0x3ba   :  { %2212 = vst [vmem:[#allocation2 + $0x50] sm:$0xff] %v1988_v43  ;;  %v1991_v48 = vadd.f32 %v2750_v46, %v3538_v26  ;;  %v1982_v49 = vpop.f32.mrb[71].mxu1 }
 0x3bb   :  { %2210 = vst [vmem:[#allocation2 + $0x40] sm:$0xff] %v1980_v45  ;;  %v1983_v51 = vadd.f32 %v3538_v26, %v1982_v49 }
 0x3bc   :  { %2213 = vst [vmem:[#allocation2 + $0x58] sm:$0xff] %v1991_v48 }
 0x3bd   :  { %2211 = vst [vmem:[#allocation2 + $0x48] sm:$0xff] %v1983_v51 }
 0x3bf   :  { %v2753_v52 = vpop.f32.mrb[72].mxu1 }
 0x3c0   :  { %v2004_v53 = vadd.f32 %v2753_v52, %v3538_v26  ;;  %v1995_v54 = vpop.f32.mrb[73].mxu1 }
 0x3c1   :  { %v1996_v55 = vadd.f32 %v3538_v26, %v1995_v54  ;;  %v2754_v56 = vpop.f32.mrb[74].mxu1 }
 0x3c2   :  { %2216 = vst [vmem:[#allocation2 + $0x70] sm:$0xff] %v2004_v53  ;;  %v2007_v50 = vadd.f32 %v2754_v56, %v3538_v26  ;;  %v1998_v57 = vpop.f32.mrb[75].mxu1 }
 0x3c3   :  { %2214 = vst [vmem:[#allocation2 + $0x60] sm:$0xff] %v1996_v55  ;;  %v1999_v58 = vadd.f32 %v3538_v26, %v1998_v57 }
 0x3c4   :  { %2217 = vst [vmem:[#allocation2 + $0x78] sm:$0xff] %v2007_v50 }
 0x3c5   :  { %2215 = vst [vmem:[#allocation2 + $0x68] sm:$0xff] %v1999_v58 }
 0x3c7   :  { %v2757_v59 = vpop.f32.mrb[76].mxu1 }
 0x3c8   :  { %v2020_v60 = vadd.f32 %v2757_v59, %v3538_v26  ;;  %v2011_v61 = vpop.f32.mrb[77].mxu1 }
 0x3c9   :  { %v2012_v62 = vadd.f32 %v3538_v26, %v2011_v61  ;;  %v2758_v63 = vpop.f32.mrb[78].mxu1 }
 0x3ca   :  { %2220 = vst [vmem:[#allocation2 + $0x90] sm:$0xff] %v2020_v60  ;;  %v2023_v0 = vadd.f32 %v2758_v63, %v3538_v26  ;;  %v2014_v1 = vpop.f32.mrb[79].mxu1 }
 0x3cb   :  { %2218 = vst [vmem:[#allocation2 + $0x80] sm:$0xff] %v2012_v62  ;;  %v2015_v2 = vadd.f32 %v3538_v26, %v2014_v1 }
 0x3cc   :  { %2221 = vst [vmem:[#allocation2 + $0x98] sm:$0xff] %v2023_v0 }
 0x3cd   :  { %2219 = vst [vmem:[#allocation2 + $0x88] sm:$0xff] %v2015_v2 }
 0x3cf   :  { %v2761_v3 = vpop.f32.mrb[80].mxu1 }
 0x3d0   :  { %v2036_v4 = vadd.f32 %v2761_v3, %v3538_v26  ;;  %v2027_v6 = vpop.f32.mrb[81].mxu1 }
 0x3d1   :  { %v2028_v5 = vadd.f32 %v3538_v26, %v2027_v6  ;;  %v2762_v7 = vpop.f32.mrb[82].mxu1 }
 0x3d2   :  { %2224 = vst [vmem:[#allocation2 + $0xb0] sm:$0xff] %v2036_v4  ;;  %v2039_v8 = vadd.f32 %v2762_v7, %v3538_v26  ;;  %v2030_v9 = vpop.f32.mrb[83].mxu1 }
 0x3d3   :  { %2222 = vst [vmem:[#allocation2 + $0xa0] sm:$0xff] %v2028_v5  ;;  %v2031_v10 = vadd.f32 %v3538_v26, %v2030_v9 }
 0x3d4   :  { %2225 = vst [vmem:[#allocation2 + $0xb8] sm:$0xff] %v2039_v8 }
 0x3d5   :  { %2223 = vst [vmem:[#allocation2 + $0xa8] sm:$0xff] %v2031_v10 }
 0x3d7   :  { %v2765_v11 = vpop.f32.mrb[84].mxu1 }
 0x3d8   :  { %v2052_v12 = vadd.f32 %v2765_v11, %v3538_v26  ;;  %v2043_v13 = vpop.f32.mrb[85].mxu1 }
 0x3d9   :  { %v2044_v14 = vadd.f32 %v3538_v26, %v2043_v13  ;;  %v2766_v15 = vpop.f32.mrb[86].mxu1 }
 0x3da   :  { %2228 = vst [vmem:[#allocation2 + $0xd0] sm:$0xff] %v2052_v12  ;;  %v2055_v16 = vadd.f32 %v2766_v15, %v3538_v26  ;;  %v2046_v17 = vpop.f32.mrb[87].mxu1 }
 0x3db   :  { %2226 = vst [vmem:[#allocation2 + $0xc0] sm:$0xff] %v2044_v14  ;;  %v2047_v18 = vadd.f32 %v3538_v26, %v2046_v17 }
 0x3dc   :  { %2229 = vst [vmem:[#allocation2 + $0xd8] sm:$0xff] %v2055_v16 }
 0x3dd   :  { %2227 = vst [vmem:[#allocation2 + $0xc8] sm:$0xff] %v2047_v18 }
 0x3df   :  { %v2769_v19 = vpop.f32.mrb[88].mxu1 }
 0x3e0   :  { %v2068_v20 = vadd.f32 %v2769_v19, %v3538_v26  ;;  %v2059_v21 = vpop.f32.mrb[89].mxu1 }
 0x3e1   :  { %v2060_v24 = vadd.f32 %v3538_v26, %v2059_v21  ;;  %v2770_v22 = vpop.f32.mrb[90].mxu1 }
 0x3e2   :  { %2232 = vst [vmem:[#allocation2 + $0xf0] sm:$0xff] %v2068_v20  ;;  %v2071_v23 = vadd.f32 %v2770_v22, %v3538_v26  ;;  %v2062_v25 = vpop.f32.mrb[91].mxu1 }
 0x3e3   :  { %2230 = vst [vmem:[#allocation2 + $0xe0] sm:$0xff] %v2060_v24  ;;  %v2063_v27 = vadd.f32 %v3538_v26, %v2062_v25 }
 0x3e4   :  { %2233 = vst [vmem:[#allocation2 + $0xf8] sm:$0xff] %v2071_v23 }
 0x3e5   :  { %2231 = vst [vmem:[#allocation2 + $0xe8] sm:$0xff] %v2063_v27 }
 0x3e7   :  { %v2773_v28 = vpop.f32.mrb[92].mxu1 }
 0x3e8   :  { %v2084_v29 = vadd.f32 %v2773_v28, %v3538_v26  ;;  %v2075_v30 = vpop.f32.mrb[93].mxu1 }
 0x3e9   :  { %v2076_v31 = vadd.f32 %v3538_v26, %v2075_v30  ;;  %v2774_v32 = vpop.f32.mrb[94].mxu1 }
 0x3ea   :  { %2236 = vst [vmem:[#allocation2 + $0x110] sm:$0xff] %v2084_v29  ;;  %v2087_v33 = vadd.f32 %v2774_v32, %v3538_v26  ;;  %v2078_v34 = vpop.f32.mrb[95].mxu1 }
 0x3eb   :  { %2234 = vst [vmem:[#allocation2 + $0x100] sm:$0xff] %v2076_v31  ;;  %v2079_v35 = vadd.f32 %v3538_v26, %v2078_v34 }
 0x3ec   :  { %2237 = vst [vmem:[#allocation2 + $0x118] sm:$0xff] %v2087_v33 }
 0x3ed   :  { %2235 = vst [vmem:[#allocation2 + $0x108] sm:$0xff] %v2079_v35 }
 0x3ef   :  { %v2777_v36 = vpop.f32.mrb[96].mxu1 }
 0x3f0   :  { %v2100_v37 = vadd.f32 %v2777_v36, %v3538_v26  ;;  %v2091_v38 = vpop.f32.mrb[97].mxu1 }
 0x3f1   :  { %v2092_v47 = vadd.f32 %v3538_v26, %v2091_v38  ;;  %v2778_v39 = vpop.f32.mrb[98].mxu1 }
 0x3f2   :  { %2240 = vst [vmem:[#allocation2 + $0x130] sm:$0xff] %v2100_v37  ;;  %v2103_v40 = vadd.f32 %v2778_v39, %v3538_v26  ;;  %v2094_v41 = vpop.f32.mrb[99].mxu1 }
 0x3f3   :  { %2238 = vst [vmem:[#allocation2 + $0x120] sm:$0xff] %v2092_v47  ;;  %v2095_v42 = vadd.f32 %v3538_v26, %v2094_v41 }
 0x3f4   :  { %2241 = vst [vmem:[#allocation2 + $0x138] sm:$0xff] %v2103_v40 }
 0x3f5   :  { %2239 = vst [vmem:[#allocation2 + $0x128] sm:$0xff] %v2095_v42 }
 0x3f7   :  { %v2781_v43 = vpop.f32.mrb[100].mxu1 }
 0x3f8   :  { %v2116_v44 = vadd.f32 %v2781_v43, %v3538_v26  ;;  %v2107_v45 = vpop.f32.mrb[101].mxu1 }
 0x3f9   :  { %v2108_v46 = vadd.f32 %v3538_v26, %v2107_v45  ;;  %v2782_v48 = vpop.f32.mrb[102].mxu1 }
 0x3fa   :  { %2244 = vst [vmem:[#allocation2 + $0x150] sm:$0xff] %v2116_v44  ;;  %v2119_v49 = vadd.f32 %v2782_v48, %v3538_v26  ;;  %v2110_v51 = vpop.f32.mrb[103].mxu1 }
 0x3fb   :  { %2242 = vst [vmem:[#allocation2 + $0x140] sm:$0xff] %v2108_v46  ;;  %v2111_v52 = vadd.f32 %v3538_v26, %v2110_v51 }
 0x3fc   :  { %2245 = vst [vmem:[#allocation2 + $0x158] sm:$0xff] %v2119_v49 }
 0x3fd   :  { %2243 = vst [vmem:[#allocation2 + $0x148] sm:$0xff] %v2111_v52 }
 0x3ff   :  { %v2785_v53 = vpop.f32.mrb[104].mxu1 }
 0x400   :  { %v2132_v54 = vadd.f32 %v2785_v53, %v3538_v26  ;;  %v2123_v55 = vpop.f32.mrb[105].mxu1 }
 0x401   :  { %v2124_v56 = vadd.f32 %v3538_v26, %v2123_v55  ;;  %v2786_v50 = vpop.f32.mrb[106].mxu1 }
 0x402   :  { %2248 = vst [vmem:[#allocation2 + $0x170] sm:$0xff] %v2132_v54  ;;  %v2135_v57 = vadd.f32 %v2786_v50, %v3538_v26  ;;  %v2126_v58 = vpop.f32.mrb[107].mxu1 }
 0x403   :  { %2246 = vst [vmem:[#allocation2 + $0x160] sm:$0xff] %v2124_v56  ;;  %v2127_v59 = vadd.f32 %v3538_v26, %v2126_v58 }
 0x404   :  { %2249 = vst [vmem:[#allocation2 + $0x178] sm:$0xff] %v2135_v57 }
 0x405   :  { %2247 = vst [vmem:[#allocation2 + $0x168] sm:$0xff] %v2127_v59 }
 0x407   :  { %v2789_v60 = vpop.f32.mrb[108].mxu1 }
 0x408   :  { %v2148_v61 = vadd.f32 %v2789_v60, %v3538_v26  ;;  %v2139_v62 = vpop.f32.mrb[109].mxu1 }
 0x409   :  { %v2140_v63 = vadd.f32 %v3538_v26, %v2139_v62  ;;  %v2790_v0 = vpop.f32.mrb[110].mxu1 }
 0x40a   :  { %2252 = vst [vmem:[#allocation2 + $0x190] sm:$0xff] %v2148_v61  ;;  %v2151_v1 = vadd.f32 %v2790_v0, %v3538_v26  ;;  %v2142_v2 = vpop.f32.mrb[111].mxu1 }
 0x40b   :  { %2250 = vst [vmem:[#allocation2 + $0x180] sm:$0xff] %v2140_v63  ;;  %v2143_v3 = vadd.f32 %v3538_v26, %v2142_v2 }
 0x40c   :  { %2253 = vst [vmem:[#allocation2 + $0x198] sm:$0xff] %v2151_v1 }
 0x40d   :  { %2251 = vst [vmem:[#allocation2 + $0x188] sm:$0xff] %v2143_v3 }
 0x40f   :  { %v2793_v4 = vpop.f32.mrb[112].mxu1 }
 0x410   :  { %v2164_v6 = vadd.f32 %v2793_v4, %v3538_v26  ;;  %v2155_v5 = vpop.f32.mrb[113].mxu1 }
 0x411   :  { %v2156_v7 = vadd.f32 %v3538_v26, %v2155_v5  ;;  %v2794_v8 = vpop.f32.mrb[114].mxu1 }
 0x412   :  { %2256 = vst [vmem:[#allocation2 + $0x1b0] sm:$0xff] %v2164_v6  ;;  %v2167_v9 = vadd.f32 %v2794_v8, %v3538_v26  ;;  %v2158_v10 = vpop.f32.mrb[115].mxu1 }
 0x413   :  { %2254 = vst [vmem:[#allocation2 + $0x1a0] sm:$0xff] %v2156_v7  ;;  %v2159_v11 = vadd.f32 %v3538_v26, %v2158_v10 }
 0x414   :  { %2257 = vst [vmem:[#allocation2 + $0x1b8] sm:$0xff] %v2167_v9 }
 0x415   :  { %2255 = vst [vmem:[#allocation2 + $0x1a8] sm:$0xff] %v2159_v11 }
 0x417   :  { %v2797_v12 = vpop.f32.mrb[116].mxu1 }
 0x418   :  { %v2180_v13 = vadd.f32 %v2797_v12, %v3538_v26  ;;  %v2171_v14 = vpop.f32.mrb[117].mxu1 }
 0x419   :  { %v2172_v15 = vadd.f32 %v3538_v26, %v2171_v14  ;;  %v2798_v16 = vpop.f32.mrb[118].mxu1 }
 0x41a   :  { %2260 = vst [vmem:[#allocation2 + $0x1d0] sm:$0xff] %v2180_v13  ;;  %v2183_v17 = vadd.f32 %v2798_v16, %v3538_v26  ;;  %v2174_v18 = vpop.f32.mrb[119].mxu1 }
 0x41b   :  { %2258 = vst [vmem:[#allocation2 + $0x1c0] sm:$0xff] %v2172_v15  ;;  %v2175_v19 = vadd.f32 %v3538_v26, %v2174_v18 }
 0x41c   :  { %2261 = vst [vmem:[#allocation2 + $0x1d8] sm:$0xff] %v2183_v17 }
 0x41d   :  { %2259 = vst [vmem:[#allocation2 + $0x1c8] sm:$0xff] %v2175_v19 }
 0x41f   :  { %v2801_v20 = vpop.f32.mrb[120].mxu1 }
 0x420   :  { %v2196_v21 = vadd.f32 %v2801_v20, %v3538_v26  ;;  %v2187_v24 = vpop.f32.mrb[121].mxu1 }
 0x421   :  { %v2188_v22 = vadd.f32 %v3538_v26, %v2187_v24  ;;  %v2802_v23 = vpop.f32.mrb[122].mxu1 }
 0x422   :  { %2264 = vst [vmem:[#allocation2 + $0x1f0] sm:$0xff] %v2196_v21  ;;  %v2199_v25 = vadd.f32 %v2802_v23, %v3538_v26  ;;  %v2190_v27 = vpop.f32.mrb[123].mxu1 }
 0x423   :  { %2262 = vst [vmem:[#allocation2 + $0x1e0] sm:$0xff] %v2188_v22  ;;  %v2191_v28 = vadd.f32 %v3538_v26, %v2190_v27 }
 0x424   :  { %2265 = vst [vmem:[#allocation2 + $0x1f8] sm:$0xff] %v2199_v25 }
 0x425   :  { %2263 = vst [vmem:[#allocation2 + $0x1e8] sm:$0xff] %v2191_v28 }
 0x426   :  { %3051 = shalt.err (!%p3048_p4)
}
 0x427   :  { %s3052_s15 = scalar_lea.hbm %s3625_s9, 8192 }
 0x428   :  { %p3053_p5 = scmp.ne.s32.totalorder %s3625_s9, %s3052_s15  ;;  %p3056_p6 = scmp.lt.u32.totalorder %s3052_s15, %s3625_s9 }
 0x42a   :  { %p3058_p7 = pnand %p3056_p6, %p3053_p5 }
 0x42c   :  { %3061 = shalt.err (!%p3058_p7)
}
 0x42d   :  { %s3065_s4 = smov 128   ;;  %s3066_s19 = smov 8  }
 0x42e   :  { %2277 = dma.vmem_to_hbm [thread:$0]  %s2272_s11, 8192, %s3625_s9, [#allocation3], %s3065_s4, %s3065_s4, %s3066_s19  }
 0x42f   :  { %3062 = dma.done.wait [#allocation3], 8192  }
 0x430   :  { %3063 = vsyncadd [#allocation3], 4294959104 }
 0x431   :  { %2281 = vsyncpa [#allocation3], 1 }

</bundles_post_ra>
